<compile_context>
chip_gen: v7x
topology: tpu7x:2x2x1
jax: 0.10.0
libtpu: 0.0.40
codegen_flags: <defaults>
</compile_context>

<pallas_src>
import math

import jax
import jax.numpy as jnp
from jax.experimental import pallas as pl
from jax.experimental.pallas import tpu as pltpu

FC1_UNITS = 1024
FC2_UNITS = 512
FC3_UNITS = 64

_LANE = 128          # TPU lane width
_FC3_PAD = 128       # fc3 padded to a full lane-width tile


def _round_up(x, m):
    return ((x + m - 1) // m) * m


def _actor_kernel(x_ref,
                  w1_ref, b1_ref,
                  w2_ref, b2_ref,
                  w3_ref, b3_ref,
                  w4_ref, b4_ref,
                  out_ref):
    x = x_ref[...]  # bf16 [TM, state_size]

    # fc1 + relu  (bf16 MXU matmul, f32 accumulation; epilogue in f32)
    h1 = jnp.dot(x, w1_ref[...], preferred_element_type=jnp.float32) + b1_ref[...]
    h1 = jnp.maximum(h1, 0.0).astype(jnp.bfloat16)

    # fc2 + relu
    h2 = jnp.dot(h1, w2_ref[...], preferred_element_type=jnp.float32) + b2_ref[...]
    h2 = jnp.maximum(h2, 0.0).astype(jnp.bfloat16)

    # fc3 + relu   (fc3 zero-padded to 128 lanes; padding stays exactly 0 after relu)
    h3 = jnp.dot(h2, w3_ref[...], preferred_element_type=jnp.float32) + b3_ref[...]
    h3 = jnp.maximum(h3, 0.0).astype(jnp.bfloat16)

    # fc4 + tanh   (action dim zero-padded to 128 lanes -> lane-dense output store;
    #               tanh runs on the EUP slot, effectively free)
    h4 = jnp.dot(h3, w4_ref[...], preferred_element_type=jnp.float32) + b4_ref[...]
    out_ref[...] = jnp.tanh(h4).astype(out_ref.dtype)


def init_actor_params(key, state_size, action_size):
    """Deterministic init mirroring Actor.reset_parameters():
       fc1..fc3 ~ U(-1/sqrt(weight.size()[0]), +...) (the reference's quirk of
       using out_features as 'fan_in'), fc4 ~ U(-3e-3, 3e-3).
       Weights are stored transposed relative to PyTorch: [in, out]."""
    keys = jax.random.split(key, 8)

    def uniform(k, shape, lim):
        return jax.random.uniform(k, shape, jnp.float32, -lim, lim)

    lim1 = 1.0 / math.sqrt(FC1_UNITS)
    lim2 = 1.0 / math.sqrt(FC2_UNITS)
    lim3 = 1.0 / math.sqrt(FC3_UNITS)

    return {
        "w1": uniform(keys[0], (state_size, FC1_UNITS), lim1),
        "b1": uniform(keys[1], (1, FC1_UNITS), lim1),
        "w2": uniform(keys[2], (FC1_UNITS, FC2_UNITS), lim2),
        "b2": uniform(keys[3], (1, FC2_UNITS), lim2),
        "w3": uniform(keys[4], (FC2_UNITS, FC3_UNITS), lim3),
        "b3": uniform(keys[5], (1, FC3_UNITS), lim3),
        "w4": uniform(keys[6], (FC3_UNITS, action_size), 3e-3),
        "b4": uniform(keys[7], (1, action_size), 3e-3),
    }


def prepare_kernel_params(params):
    """One-time conversion of logical f32 params into kernel-ready params:
       bf16 weights, f32 biases, fc3/fc4 zero-padded to lane width (128)."""
    action_size = params["w4"].shape[1]
    act_pad = _round_up(action_size, _LANE)

    w3p = jnp.zeros((FC2_UNITS, _FC3_PAD), jnp.bfloat16)
    w3p = w3p.at[:, :FC3_UNITS].set(params["w3"].astype(jnp.bfloat16))
    b3p = jnp.zeros((1, _FC3_PAD), jnp.float32)
    b3p = b3p.at[:, :FC3_UNITS].set(params["b3"].astype(jnp.float32))

    w4p = jnp.zeros((_FC3_PAD, act_pad), jnp.bfloat16)
    w4p = w4p.at[:FC3_UNITS, :action_size].set(params["w4"].astype(jnp.bfloat16))
    b4p = jnp.zeros((1, act_pad), jnp.float32)
    b4p = b4p.at[:, :action_size].set(params["b4"].astype(jnp.float32))

    return {
        "w1": params["w1"].astype(jnp.bfloat16),
        "b1": params["b1"].astype(jnp.float32),
        "w2": params["w2"].astype(jnp.bfloat16),
        "b2": params["b2"].astype(jnp.float32),
        "w3": w3p, "b3": b3p,
        "w4": w4p, "b4": b4p,
    }


def actor_forward(x, kparams, action_size, *, tm=256):
    """Run the Actor forward pass as a single batch-tiled Pallas TPU kernel.

    x: [batch, state_size] float32
    kparams: output of prepare_kernel_params (bf16 weights, padded tail layers)
    returns: [batch, action_size] float32 in (-1, 1)
    """
    batch, state_size = x.shape
    act_pad = kparams["w4"].shape[1]

    # Batch tile: multiple of 16 (bf16 sublane packing), capped at `tm`.
    if batch >= tm:
        TM = tm
    else:
        TM = max(16, _round_up(batch, 16))
    padded_batch = _round_up(batch, TM)

    xb = x.astype(jnp.bfloat16)
    if padded_batch != batch:
        xb = jnp.zeros((padded_batch, state_size), jnp.bfloat16).at[:batch].set(xb)

    def resident(arr):
        # Whole-array block with a constant index_map -> DMA'd once, stays in VMEM.
        return pl.BlockSpec(arr.shape, lambda i: (0, 0))

    in_specs = [
        pl.BlockSpec((TM, state_size), lambda i: (i, 0)),   # x tile (pipelined)
        resident(kparams["w1"]), resident(kparams["b1"]),
        resident(kparams["w2"]), resident(kparams["b2"]),
        resident(kparams["w3"]), resident(kparams["b3"]),
        resident(kparams["w4"]), resident(kparams["b4"]),
    ]
    out_spec = pl.BlockSpec((TM, act_pad), lambda i: (i, 0))

    out_padded = pl.pallas_call(
        _actor_kernel,
        out_shape=jax.ShapeDtypeStruct((padded_batch, act_pad), jnp.float32),
        grid=(padded_batch // TM,),
        in_specs=in_specs,
        out_specs=out_spec,
        compiler_params=pltpu.CompilerParams(
            dimension_semantics=("parallel",),   # shards batch tiles across TCs on v7x
        ),
    )(xb,
      kparams["w1"], kparams["b1"],
      kparams["w2"], kparams["b2"],
      kparams["w3"], kparams["b3"],
      kparams["w4"], kparams["b4"])

    return out_padded[:batch, :action_size]


def _reference_forward_f32(x, p):
    h = jnp.maximum(x @ p["w1"] + p["b1"], 0.0)
    h = jnp.maximum(h @ p["w2"] + p["b2"], 0.0)
    h = jnp.maximum(h @ p["w3"] + p["b3"], 0.0)
    return jnp.tanh(h @ p["w4"] + p["b4"])


def _reference_forward_mixed(x, kp, action_size):
    """Pure-JAX reference following the kernel's exact mixed-precision path."""
    h = x.astype(jnp.bfloat16)
    h = jnp.maximum(jnp.dot(h, kp["w1"], preferred_element_type=jnp.float32) + kp["b1"], 0.0)
    h = h.astype(jnp.bfloat16)
    h = jnp.maximum(jnp.dot(h, kp["w2"], preferred_element_type=jnp.float32) + kp["b2"], 0.0)
    h = h.astype(jnp.bfloat16)
    h = jnp.maximum(jnp.dot(h, kp["w3"], preferred_element_type=jnp.float32) + kp["b3"], 0.0)
    h = h.astype(jnp.bfloat16)
    h = jnp.tanh(jnp.dot(h, kp["w4"], preferred_element_type=jnp.float32) + kp["b4"])
    return h[:, :action_size]


if __name__ == "__main__":
    key = jax.random.PRNGKey(0)
    k_params, k_x = jax.random.split(key)

    batch = 2
    state_size = 33   # e.g. a continuous-control observation dim
    action_size = 4

    params = init_actor_params(k_params, state_size, action_size)
    kparams = prepare_kernel_params(params)
    x = jax.random.normal(k_x, (batch, state_size), jnp.float32)

    out = actor_forward(x, kparams, action_size)
    out = jax.block_until_ready(out)

    ref_mixed = _reference_forward_mixed(x, kparams, action_size)
    ref_f32 = _reference_forward_f32(x, params)

    assert out.shape == (batch, action_size)
    assert bool(jnp.all(jnp.abs(out) <= 1.0))
    # Matches the identical bf16/f32-accumulate path tightly...
    assert jnp.allclose(out, ref_mixed, atol=5e-3, rtol=1e-2)
    # ...and the full-f32 reference within bf16 quantization error.
    assert jnp.allclose(out, ref_f32, atol=1e-2, rtol=1e-2)

    print("KERNEL_OK")
</pallas_src>

<mosaic_0001>
module attributes {stable_mosaic.version = 11 : i64} {
  func.func @_actor_kernel(%arg0: i32, %arg1: memref<16x33xbf16, #tpu.memory_space<vmem>>, %arg2: memref<33x1024xbf16, #tpu.memory_space<vmem>>, %arg3: memref<1x1024xf32, #tpu.memory_space<vmem>>, %arg4: memref<1024x512xbf16, #tpu.memory_space<vmem>>, %arg5: memref<1x512xf32, #tpu.memory_space<vmem>>, %arg6: memref<512x128xbf16, #tpu.memory_space<vmem>>, %arg7: memref<1x128xf32, #tpu.memory_space<vmem>>, %arg8: memref<128x128xbf16, #tpu.memory_space<vmem>>, %arg9: memref<1x128xf32, #tpu.memory_space<vmem>>, %arg10: memref<16x128xf32, #tpu.memory_space<vmem>>) attributes {dimension_semantics = [#tpu.dimension_semantics<parallel>], iteration_bounds = array<i64: 1>, scalar_prefetch = 0 : i64, scratch_operands = 0 : i64, tpu.core_type = #tpu.core_type<tc>, window_params = [{transform_indices = @transform_0, window_bounds = array<i64: 16, 33>}, {pipeline_mode = #tpu.pipeline_mode<synchronous>, transform_indices = @transform_1, window_bounds = array<i64: 33, 1024>}, {pipeline_mode = #tpu.pipeline_mode<synchronous>, transform_indices = @transform_2, window_bounds = array<i64: 1, 1024>}, {pipeline_mode = #tpu.pipeline_mode<synchronous>, transform_indices = @transform_3, window_bounds = array<i64: 1024, 512>}, {pipeline_mode = #tpu.pipeline_mode<synchronous>, transform_indices = @transform_4, window_bounds = array<i64: 1, 512>}, {pipeline_mode = #tpu.pipeline_mode<synchronous>, transform_indices = @transform_5, window_bounds = array<i64: 512, 128>}, {pipeline_mode = #tpu.pipeline_mode<synchronous>, transform_indices = @transform_6, window_bounds = array<i64: 1, 128>}, {pipeline_mode = #tpu.pipeline_mode<synchronous>, transform_indices = @transform_7, window_bounds = array<i64: 128, 128>}, {pipeline_mode = #tpu.pipeline_mode<synchronous>, transform_indices = @transform_8, window_bounds = array<i64: 1, 128>}, {transform_indices = @transform_9, window_bounds = array<i64: 16, 128>}]} {
    %c0 = arith.constant 0 : index
    %c0_0 = arith.constant 0 : index
    %0 = vector.load %arg1[%c0, %c0_0] : memref<16x33xbf16, #tpu.memory_space<vmem>>, vector<16x33xbf16>
    %c0_1 = arith.constant 0 : index
    %c0_2 = arith.constant 0 : index
    %1 = vector.load %arg2[%c0_1, %c0_2] : memref<33x1024xbf16, #tpu.memory_space<vmem>>, vector<33x1024xbf16>
    %cst = arith.constant dense<0.000000e+00> : vector<16x1024xf32>
    %2 = tpu.matmul %0, %1, %cst {dimension_numbers = #tpu.dot_dimension_numbers<[1], [0], [0], [1], [0, 0, 1, 1], [], []>} : vector<16x33xbf16>, vector<33x1024xbf16>, vector<16x1024xf32> -> vector<16x1024xf32>
    %c0_3 = arith.constant 0 : index
    %c0_4 = arith.constant 0 : index
    %3 = vector.load %arg3[%c0_3, %c0_4] : memref<1x1024xf32, #tpu.memory_space<vmem>>, vector<1x1024xf32>
    %4 = vector.broadcast %3 : vector<1x1024xf32> to vector<16x1024xf32>
    %5 = arith.addf %2, %4 : vector<16x1024xf32>
    %cst_5 = arith.constant 0.000000e+00 : f32
    %6 = vector.broadcast %cst_5 : f32 to vector<16x1024xf32>
    %7 = arith.maximumf %5, %6 : vector<16x1024xf32>
    %8 = arith.truncf %7 : vector<16x1024xf32> to vector<16x1024xbf16>
    %c0_6 = arith.constant 0 : index
    %c0_7 = arith.constant 0 : index
    %9 = vector.load %arg4[%c0_6, %c0_7] : memref<1024x512xbf16, #tpu.memory_space<vmem>>, vector<1024x512xbf16>
    %cst_8 = arith.constant dense<0.000000e+00> : vector<16x512xf32>
    %10 = tpu.matmul %8, %9, %cst_8 {dimension_numbers = #tpu.dot_dimension_numbers<[1], [0], [0], [1], [0, 0, 1, 1], [], []>} : vector<16x1024xbf16>, vector<1024x512xbf16>, vector<16x512xf32> -> vector<16x512xf32>
    %c0_9 = arith.constant 0 : index
    %c0_10 = arith.constant 0 : index
    %11 = vector.load %arg5[%c0_9, %c0_10] : memref<1x512xf32, #tpu.memory_space<vmem>>, vector<1x512xf32>
    %12 = vector.broadcast %11 : vector<1x512xf32> to vector<16x512xf32>
    %13 = arith.addf %10, %12 : vector<16x512xf32>
    %cst_11 = arith.constant 0.000000e+00 : f32
    %14 = vector.broadcast %cst_11 : f32 to vector<16x512xf32>
    %15 = arith.maximumf %13, %14 : vector<16x512xf32>
    %16 = arith.truncf %15 : vector<16x512xf32> to vector<16x512xbf16>
    %c0_12 = arith.constant 0 : index
    %c0_13 = arith.constant 0 : index
    %17 = vector.load %arg6[%c0_12, %c0_13] : memref<512x128xbf16, #tpu.memory_space<vmem>>, vector<512x128xbf16>
    %cst_14 = arith.constant dense<0.000000e+00> : vector<16x128xf32>
    %18 = tpu.matmul %16, %17, %cst_14 {dimension_numbers = #tpu.dot_dimension_numbers<[1], [0], [0], [1], [0, 0, 1, 1], [], []>} : vector<16x512xbf16>, vector<512x128xbf16>, vector<16x128xf32> -> vector<16x128xf32>
    %c0_15 = arith.constant 0 : index
    %c0_16 = arith.constant 0 : index
    %19 = vector.load %arg7[%c0_15, %c0_16] : memref<1x128xf32, #tpu.memory_space<vmem>>, vector<1x128xf32>
    %20 = vector.broadcast %19 : vector<1x128xf32> to vector<16x128xf32>
    %21 = arith.addf %18, %20 : vector<16x128xf32>
    %cst_17 = arith.constant 0.000000e+00 : f32
    %22 = vector.broadcast %cst_17 : f32 to vector<16x128xf32>
    %23 = arith.maximumf %21, %22 : vector<16x128xf32>
    %24 = arith.truncf %23 : vector<16x128xf32> to vector<16x128xbf16>
    %c0_18 = arith.constant 0 : index
    %c0_19 = arith.constant 0 : index
    %25 = vector.load %arg8[%c0_18, %c0_19] : memref<128x128xbf16, #tpu.memory_space<vmem>>, vector<128x128xbf16>
    %cst_20 = arith.constant dense<0.000000e+00> : vector<16x128xf32>
    %26 = tpu.matmul %24, %25, %cst_20 {dimension_numbers = #tpu.dot_dimension_numbers<[1], [0], [0], [1], [0, 0, 1, 1], [], []>} : vector<16x128xbf16>, vector<128x128xbf16>, vector<16x128xf32> -> vector<16x128xf32>
    %c0_21 = arith.constant 0 : index
    %c0_22 = arith.constant 0 : index
    %27 = vector.load %arg9[%c0_21, %c0_22] : memref<1x128xf32, #tpu.memory_space<vmem>>, vector<1x128xf32>
    %28 = vector.broadcast %27 : vector<1x128xf32> to vector<16x128xf32>
    %29 = arith.addf %26, %28 : vector<16x128xf32>
    %30 = math.tanh %29 : vector<16x128xf32>
    %c0_23 = arith.constant 0 : index
    %c0_24 = arith.constant 0 : index
    %31 = vector.load %arg10[%c0_23, %c0_24] : memref<16x128xf32, #tpu.memory_space<vmem>>, vector<16x128xf32>
    tpu.vector_store %arg10[%c0_23, %c0_24], %30 {strides = array<i32>} : memref<16x128xf32, #tpu.memory_space<vmem>>, vector<16x128xf32>,
    return
  }
  func.func @transform_0(%arg0: i32) -> (i32, i32) {
    %c0_i32 = arith.constant 0 : i32
    %c0_i32_0 = arith.constant 0 : i32
    return %arg0, %c0_i32 : i32, i32
  }
  func.func @transform_1(%arg0: i32) -> (i32, i32) {
    %c0_i32 = arith.constant 0 : i32
    %c0_i32_0 = arith.constant 0 : i32
    %c0_i32_1 = arith.constant 0 : i32
    return %c0_i32, %c0_i32_0 : i32, i32
  }
  func.func @transform_2(%arg0: i32) -> (i32, i32) {
    %c0_i32 = arith.constant 0 : i32
    %c0_i32_0 = arith.constant 0 : i32
    %c0_i32_1 = arith.constant 0 : i32
    return %c0_i32, %c0_i32_0 : i32, i32
  }
  func.func @transform_3(%arg0: i32) -> (i32, i32) {
    %c0_i32 = arith.constant 0 : i32
    %c0_i32_0 = arith.constant 0 : i32
    %c0_i32_1 = arith.constant 0 : i32
    return %c0_i32, %c0_i32_0 : i32, i32
  }
  func.func @transform_4(%arg0: i32) -> (i32, i32) {
    %c0_i32 = arith.constant 0 : i32
    %c0_i32_0 = arith.constant 0 : i32
    %c0_i32_1 = arith.constant 0 : i32
    return %c0_i32, %c0_i32_0 : i32, i32
  }
  func.func @transform_5(%arg0: i32) -> (i32, i32) {
    %c0_i32 = arith.constant 0 : i32
    %c0_i32_0 = arith.constant 0 : i32
    %c0_i32_1 = arith.constant 0 : i32
    return %c0_i32, %c0_i32_0 : i32, i32
  }
  func.func @transform_6(%arg0: i32) -> (i32, i32) {
    %c0_i32 = arith.constant 0 : i32
    %c0_i32_0 = arith.constant 0 : i32
    %c0_i32_1 = arith.constant 0 : i32
    return %c0_i32, %c0_i32_0 : i32, i32
  }
  func.func @transform_7(%arg0: i32) -> (i32, i32) {
    %c0_i32 = arith.constant 0 : i32
    %c0_i32_0 = arith.constant 0 : i32
    %c0_i32_1 = arith.constant 0 : i32
    return %c0_i32, %c0_i32_0 : i32, i32
  }
  func.func @transform_8(%arg0: i32) -> (i32, i32) {
    %c0_i32 = arith.constant 0 : i32
    %c0_i32_0 = arith.constant 0 : i32
    %c0_i32_1 = arith.constant 0 : i32
    return %c0_i32, %c0_i32_0 : i32, i32
  }
  func.func @transform_9(%arg0: i32) -> (i32, i32) {
    %c0_i32 = arith.constant 0 : i32
    %c0_i32_0 = arith.constant 0 : i32
    return %arg0, %c0_i32 : i32, i32
  }
}

</mosaic_0001>

<bundles_post_ra>
// kernel: tpu_custom_call.1
= control target key start
LH: loop header
LB: loop body
LE: loop exit
PB: predicated region body
PF: predicated region fallthrough
CT: control target
= control target key end

     0   :  { %14 = vsyncpa [#allocation3], 0  ;;  %s4219_s0 = inlined_call_operand.hbm [shape: bf16[16,33], index: 0, kind: input, shape index: {}]   ;;  %s4220_s1 = inlined_call_operand.hbm [shape: bf16[33,1024], index: 1, kind: input, shape index: {}]   ;;  %s4221_s2 = inlined_call_operand.hbm [shape: f32[1,1024], index: 2, kind: input, shape index: {}]   ;;  %s4222_s3 = inlined_call_operand.hbm [shape: bf16[1024,512], index: 3, kind: input, shape index: {}]   ;;  %s4223_s4 = inlined_call_operand.vmem [shape: f32[1,512], index: 4, kind: input, shape index: {}]   ;;  %s4224_s5 = inlined_call_operand.hbm [shape: bf16[512,128], index: 5, kind: input, shape index: {}]   ;;  %s4225_s6 = inlined_call_operand.vmem [shape: f32[1,128], index: 6, kind: input, shape index: {}]   ;;  %s4226_s7 = inlined_call_operand.hbm [shape: bf16[128,128], index: 7, kind: input, shape index: {}]   ;;  %s4227_s8 = inlined_call_operand.vmem [shape: f32[1,128], index: 8, kind: input, shape index: {}]   ;;  %s4228_s9 = inlined_call_operand.hbm [shape: f32[16,128], index: 9, kind: output, shape index: {}]  }
   0x1   :  { %15 = vsyncpa [#allocation6], 0 }
   0x2   :  { %16 = vsyncpa [#allocation9], 0 }
   0x3   :  { %17 = vsyncpa [#allocation12], 0 }
   0x4   :  { %18 = vsyncpa [#allocation4], 0  ;;  %s3959_s30 = smov [#allocation5]   ;;  %s3795_s13 = scalar_lea.hbm %s4220_s1, 2560 }
   0x5   :  { %s36_s10 = sshll.u32 %s3959_s30, 4  ;;  %p3796_p0 = scmp.ne.s32.totalorder %s4220_s1, %s3795_s13  ;;  %s37_s10 = int_to_ptr.vmem [resolvable:$true] %s36_s10 }
   0x6   :  { %p3799_p1 = scmp.lt.u32.totalorder %s3795_s13, %s4220_s1 }
   0x8   :  { %p3801_p2 = pnand %p3799_p1, %p3796_p0 }
   0xa   :  { %3804 = shalt.err (!%p3801_p2)
}
   0xb   :  { %s3805_s18 = scalar_lea.vmem %s37_s10, 2560  ;;  %p3810_p4 = scmp.lt.s32.totalorder %s37_s10, %s37_s10 }
   0xc   :  { %p3806_p3 = scmp.ne.s32.totalorder %s37_s10, %s3805_s18  ;;  %p3811_p5 = scmp.lt.s32.totalorder %s3805_s18, %s3805_s18 }
   0xe   :  { %p3812_p6 = por %p3811_p5, %p3810_p4 }
  0x10   :  { %p3813_p7 = pnand %p3812_p6, %p3806_p3 }
  0x12   :  { %3816 = shalt.err (!%p3813_p7)
}
  0x13   :  { %s3960_s19 = smov 512   ;;  %s3961_s20 = smov 32  }
  0x14   :  { %42 = dma.hbm_to_vmem [thread:$0]  %s4220_s1, 2560, %s37_s10, [#allocation6], %s3960_s19, %s3960_s19, %s3961_s20  }
  0x15   :  { %s3962_s23 = smov [#allocation8]   ;;  %s3817_s27 = scalar_lea.hbm %s4222_s3, 32768 }
  0x16   :  { %s58_s24 = sshll.u32 %s3962_s23, 4  ;;  %p3818_p8 = scmp.ne.s32.totalorder %s4222_s3, %s3817_s27  ;;  %s59_s24 = int_to_ptr.vmem [resolvable:$true] %s58_s24 }
  0x17   :  { %p3821_p9 = scmp.lt.u32.totalorder %s3817_s27, %s4222_s3 }
  0x19   :  { %p3823_p10 = pnand %p3821_p9, %p3818_p8 }
  0x1b   :  { %3826 = shalt.err (!%p3823_p10)
}
  0x1c   :  { %s3827_s12 = scalar_lea.vmem %s59_s24, 32768  ;;  %p3832_p12 = scmp.lt.s32.totalorder %s59_s24, %s59_s24 }
  0x1d   :  { %p3828_p11 = scmp.ne.s32.totalorder %s59_s24, %s3827_s12  ;;  %p3833_p13 = scmp.lt.s32.totalorder %s3827_s12, %s3827_s12 }
  0x1f   :  { %p3834_p0 = por %p3833_p13, %p3832_p12 }
  0x21   :  { %p3835_p1 = pnand %p3834_p0, %p3828_p11 }
  0x23   :  { %3838 = shalt.err (!%p3835_p1)
}
  0x24   :  { %s3963_s1 = smov 256   ;;  %s3964_s10 = smov 16  }
  0x25   :  { %64 = dma.hbm_to_vmem [thread:$0]  %s4222_s3, 32768, %s59_s24, [#allocation9], %s3963_s1, %s3963_s1, %s3964_s10  }
  0x26   :  { %s3965_s15 = smov [#allocation2]   ;;  %s3839_s19 = scalar_lea.hbm %s4219_s0, 128 }
  0x27   :  { %s24_s16 = sshll.u32 %s3965_s15, 4  ;;  %p3840_p2 = scmp.ne.s32.totalorder %s4219_s0, %s3839_s19  ;;  %s25_s16 = int_to_ptr.vmem [resolvable:$true] %s24_s16 }
  0x28   :  { %p3843_p3 = scmp.lt.u32.totalorder %s3839_s19, %s4219_s0 }
  0x2a   :  { %p3845_p4 = pnand %p3843_p3, %p3840_p2 }
  0x2c   :  { %3848 = shalt.err (!%p3845_p4)
}
  0x2d   :  { %s3849_s25 = scalar_lea.vmem %s25_s16, 128  ;;  %p3854_p6 = scmp.lt.s32.totalorder %s25_s16, %s25_s16 }
  0x2e   :  { %p3850_p5 = scmp.ne.s32.totalorder %s25_s16, %s3849_s25  ;;  %p3855_p7 = scmp.lt.s32.totalorder %s3849_s25, %s3849_s25 }
  0x30   :  { %p3856_p8 = por %p3855_p7, %p3854_p6 }
  0x32   :  { %p3857_p9 = pnand %p3856_p8, %p3850_p5 }
  0x34   :  { %3860 = shalt.err (!%p3857_p9)
}
  0x35   :  { %s3966_s3 = smov 64   ;;  %s3967_s24 = smov 4  }
  0x36   :  { %30 = dma.hbm_to_vmem [thread:$0]  %s4219_s0, 128, %s25_s16, [#allocation3], %s3966_s3, %s3966_s3, %s3967_s24  }
  0x37   :  { %s3968_s28 = smov [#allocation7]   ;;  %s3969_s30 = smov [#allocation10]  }
  0x38   :  { %s49_s29 = sshll.u32 %s3968_s28, 4  ;;  %s72_s11 = sshll.u32 %s3969_s30, 4  ;;  %s50_s29 = int_to_ptr.vmem [resolvable:$true] %s49_s29  ;;  %s73_s11 = int_to_ptr.vmem [resolvable:$true] %s72_s11 }
  0x39   :  { %s3861_s10 = scalar_lea.hbm %s4221_s2, 128 }
  0x3a   :  { %p3862_p10 = scmp.ne.s32.totalorder %s4221_s2, %s3861_s10  ;;  %p3865_p11 = scmp.lt.u32.totalorder %s3861_s10, %s4221_s2 }
  0x3c   :  { %p3867_p12 = pnand %p3865_p11, %p3862_p10 }
  0x3e   :  { %3870 = shalt.err (!%p3867_p12)
}
  0x3f   :  { %s3871_s0 = scalar_lea.vmem %s50_s29, 128  ;;  %p3876_p0 = scmp.lt.s32.totalorder %s50_s29, %s50_s29 }
  0x40   :  { %p3872_p13 = scmp.ne.s32.totalorder %s50_s29, %s3871_s0  ;;  %p3877_p1 = scmp.lt.s32.totalorder %s3871_s0, %s3871_s0 }
  0x42   :  { %p3878_p2 = por %p3877_p1, %p3876_p0 }
  0x44   :  { %p3879_p3 = pnand %p3878_p2, %p3872_p13 }
  0x46   :  { %3882 = shalt.err (!%p3879_p3)
}
  0x47   :  { %52 = dma.hbm_to_vmem [thread:$0]  %s4221_s2, 128, %s50_s29, [#allocation6]  }
  0x48   :  { %s3883_s21 = scalar_lea.hbm %s4224_s5, 4096 }
  0x49   :  { %p3884_p4 = scmp.ne.s32.totalorder %s4224_s5, %s3883_s21  ;;  %p3887_p5 = scmp.lt.u32.totalorder %s3883_s21, %s4224_s5 }
  0x4b   :  { %p3889_p6 = pnand %p3887_p5, %p3884_p4 }
  0x4d   :  { %3892 = shalt.err (!%p3889_p6)
}
  0x4e   :  { %s3893_s27 = scalar_lea.vmem %s73_s11, 4096  ;;  %p3898_p8 = scmp.lt.s32.totalorder %s73_s11, %s73_s11 }
  0x4f   :  { %p3894_p7 = scmp.ne.s32.totalorder %s73_s11, %s3893_s27  ;;  %p3899_p9 = scmp.lt.s32.totalorder %s3893_s27, %s3893_s27 }
  0x51   :  { %p3900_p10 = por %p3899_p9, %p3898_p8 }
  0x53   :  { %p3901_p11 = pnand %p3900_p10, %p3894_p7 }
  0x55   :  { %3904 = shalt.err (!%p3901_p11)
}
  0x56   :  { %78 = dma.hbm_to_vmem [thread:$0]  %s4224_s5, 4096, %s73_s11, [#allocation9], %s3966_s3, %s3966_s3, %s3967_s24  }
  0x57   :  { %s3970_s29 = smov [#allocation11]   ;;  %s3905_s10 = scalar_lea.hbm %s4226_s7, 1024 }
  0x58   :  { %s86_s30 = sshll.u32 %s3970_s29, 4  ;;  %p3906_p12 = scmp.ne.s32.totalorder %s4226_s7, %s3905_s10  ;;  %s87_s30 = int_to_ptr.vmem [resolvable:$true] %s86_s30 }
  0x59   :  { %p3909_p13 = scmp.lt.u32.totalorder %s3905_s10, %s4226_s7 }
  0x5b   :  { %p3911_p0 = pnand %p3909_p13, %p3906_p12 }
  0x5d   :  { %3914 = shalt.err (!%p3911_p0)
}
  0x5e   :  { %s3915_s0 = scalar_lea.vmem %s87_s30, 1024  ;;  %p3920_p2 = scmp.lt.s32.totalorder %s87_s30, %s87_s30 }
  0x5f   :  { %p3916_p1 = scmp.ne.s32.totalorder %s87_s30, %s3915_s0  ;;  %p3921_p3 = scmp.lt.s32.totalorder %s3915_s0, %s3915_s0 }
  0x61   :  { %p3922_p4 = por %p3921_p3, %p3920_p2 }
  0x63   :  { %p3923_p5 = pnand %p3922_p4, %p3916_p1 }
  0x65   :  { %3926 = shalt.err (!%p3923_p5)
}
  0x66   :  { %92 = dma.hbm_to_vmem [thread:$0]  %s4226_s7, 1024, %s87_s30, [#allocation12], %s3966_s3, %s3966_s3, %s3967_s24  }
  0x67   :  { %3949 = dma.done.wait [#allocation3], 128  }
  0x68   :  { %3950 = vsyncadd [#allocation3], 4294967168 }
  0x69   :  { %3951 = dma.done.wait [#allocation6], 2688  }
  0x6a   :  { %3952 = vsyncadd [#allocation6], 4294964608 }
  0x6b   :  { %3953 = dma.done.wait [#allocation9], 36864  }
  0x6c   :  { %3954 = vsyncadd [#allocation9], 4294930432 }
  0x6d   :  { %3955 = dma.done.wait [#allocation12], 1024  }
  0x6e   :  { %3956 = vsyncadd [#allocation12], 4294966272  ;;  %v3971_v0 = vmov 0   ;;  %vm287_vm0 = vcmask 1040384   ;;  %v116_v1 = vld [vmem:[#allocation5] sm:$0xff]  ;;  %v118_v13 = vld [vmem:[#allocation5 + $0x10] sm:$0xff] }
  0x6f   :  { %346 = vmatprep.mubr.bf16.mxu1 %v3971_v0  ;;  %432 = vmatprep.mubr.bf16.mxu0 %v3971_v0  ;;  %v120_v2 = vld [vmem:[#allocation5 + $0x20] sm:$0xff]  ;;  %v4111_v10 = vsel %vm287_vm0, 65535, %v3971_v0  ;;  %v122_v14 = vld [vmem:[#allocation5 + $0x30] sm:$0xff]  ;;  %v117_v19 = vld [vmem:[#allocation5 + $0x8] sm:$0xff]  ;;  %vm283_vm1 = vcmask 269312   ;;  %vm3973_vm2 = vmmov 0  }
  0x70   :  { %v124_v3 = vld [vmem:[#allocation5 + $0x40] sm:$0xff]  ;;  %v2910_v4 = vcombine.high %v116_v1, %v120_v2  ;;  %v2909_v5 = vcombine.low %v116_v1, %v120_v2  ;;  %v126_v16 = vld [vmem:[#allocation5 + $0x50] sm:$0xff]  ;;  %v121_v20 = vld [vmem:[#allocation5 + $0x28] sm:$0xff]  ;;  %v2914_v21 = vcombine.high %v118_v13, %v122_v14  ;;  %v2913_v22 = vcombine.low %v118_v13, %v122_v14  ;;  %s3974_s18 = smov [#allocation13]  }
  0x71   :  { %v128_v6 = vld [vmem:[#allocation5 + $0x60] sm:$0xff]  ;;  %v130_v17 = vld [vmem:[#allocation5 + $0x70] sm:$0xff]  ;;  %v125_v26 = vld [vmem:[#allocation5 + $0x48] sm:$0xff]  ;;  %v2912_v27 = vcombine.high %v117_v19, %v121_v20  ;;  %v2911_v34 = vcombine.low %v117_v19, %v121_v20  ;;  %s2893_s19 = sshll.u32 %s3974_s18, 4  ;;  %s2894_s19 = int_to_ptr.vmem [resolvable:$true] %s2893_s19 }
  0x72   :  { %v132_v7 = vld [vmem:[#allocation5 + $0x80] sm:$0x11]  ;;  %v2918_v8 = vcombine.high %v124_v3, %v128_v6  ;;  %314 = vmatprep.subr.bf16.mxu1 %v2910_v4  ;;  %v2917_v11 = vcombine.low %v124_v3, %v128_v6  ;;  %v134_v18 = vld [vmem:[#allocation5 + $0x90] sm:$0x11]  ;;  %v2922_v23 = vcombine.high %v126_v16, %v130_v17  ;;  %400 = vmatprep.subr.bf16.mxu0 %v2914_v21  ;;  %v129_v28 = vld [vmem:[#allocation5 + $0x68] sm:$0xff]  ;;  %s3927_s20 = scalar_lea.vmem %s2894_s19, 256  ;;  %p3932_p7 = scmp.lt.s32.totalorder %s2894_s19, %s2894_s19 }
  0x73   :  { %v2926_v9 = vcombine.high %v132_v7, %v132_v7  ;;  %315 = vmatpush1.bf16.msra.mxu1 %v2909_v5  ;;  %v2925_v12 = vcombine.low %v132_v7, %v132_v7  ;;  %v2930_v24 = vcombine.high %v134_v18, %v134_v18  ;;  %401 = vmatpush1.bf16.msra.mxu0 %v2913_v22  ;;  %v133_v31 = vld [vmem:[#allocation5 + $0x88] sm:$0x11]  ;;  %v4116_v33 = vld [vmem:[#allocation2] sm:$0xff]   ;;  %v3372_v1 = vld [vmem:[#allocation8 + $0xc] ss:$16 sps:$4 sm:$0xff]   ;;  %p3928_p6 = scmp.ne.s32.totalorder %s2894_s19, %s3927_s20  ;;  %p3933_p8 = scmp.lt.s32.totalorder %s3927_s20, %s3927_s20 }
  0x74   :  { %316 = vmatprep.subr.bf16.mxu1 %v2918_v8  ;;  %v2921_v29 = vcombine.low %v126_v16, %v130_v17  ;;  %v2929_v30 = vcombine.low %v134_v18, %v134_v18  ;;  %402 = vmatprep.subr.bf16.mxu0 %v2922_v23  ;;  %v2920_v35 = vcombine.high %v125_v26, %v129_v28  ;;  %v3369_v38 = vld [vmem:[#allocation8 + $0x4] ss:$16 sps:$4 sm:$0xff]   ;;  %v3367_v44 = vld [vmem:[#allocation8] ss:$16 sps:$4 sm:$0xff]   ;;  %v3370_v4 = vld [vmem:[#allocation8 + $0x8] ss:$16 sps:$4 sm:$0xff]  }
  0x75   :  { %v294_v15 = vand.u32 %v2926_v9, %v4111_v10  ;;  %v291_v25 = vand.u32 %v2925_v12, %v4111_v10  ;;  %v306_v32 = vand.u32 %v2930_v24, %v4111_v10  ;;  %v2928_v36 = vcombine.high %v133_v31, %v133_v31  ;;  %v119_v41 = vld [vmem:[#allocation5 + $0x18] sm:$0xff]  ;;  %v3378_v5 = vld [vmem:[#allocation8 + $0x2c] ss:$16 sps:$4 sm:$0xff]   ;;  %v3376_v7 = vld [vmem:[#allocation8 + $0x28] ss:$16 sps:$4 sm:$0xff]   ;;  %p3934_p9 = por %p3933_p8, %p3932_p7 }
  0x76   :  { %v303_v37 = vand.u32 %v2929_v30, %v4111_v10  ;;  %v2919_v39 = vcombine.low %v125_v26, %v129_v28  ;;  %v2927_v40 = vcombine.low %v133_v31, %v133_v31  ;;  %v123_v42 = vld [vmem:[#allocation5 + $0x38] sm:$0xff]  ;;  %v3384_v8 = vld [vmem:[#allocation8 + $0x4c] ss:$16 sps:$4 sm:$0xff]   ;;  %v3394_v19 = vld [vmem:[#allocation8 + $0x88] ss:$16 sps:$4 sm:$0xff]  }
  0x77   :  { %317 = vmatpush1.bf16.msra.mxu1 %v2917_v11  ;;  %403 = vmatpush1.bf16.msra.mxu0 %v2921_v29  ;;  %v300_v43 = vand.u32 %v2928_v36, %v4111_v10  ;;  %v3375_v45 = vld [vmem:[#allocation8 + $0x24] ss:$16 sps:$4 sm:$0xff]   ;;  %v2916_v50 = vcombine.high %v119_v41, %v123_v42  ;;  %v3373_v51 = vld [vmem:[#allocation8 + $0x20] ss:$16 sps:$4 sm:$0xff]   ;;  %v2915_v53 = vcombine.low %v119_v41, %v123_v42  ;;  %v3382_v11 = vld [vmem:[#allocation8 + $0x48] ss:$16 sps:$4 sm:$0xff]   ;;  %p3935_p10 = pnand %p3934_p9, %p3928_p6 }
  0x78   :  { %318 = vmatprep.subr.bf16.mxu1 %v294_v15  ;;  %404 = vmatprep.subr.bf16.mxu0 %v306_v32  ;;  %v297_v46 = vand.u32 %v2927_v40, %v4111_v10  ;;  %v127_v47 = vld [vmem:[#allocation5 + $0x58] sm:$0xff]  ;;  %v3390_v12 = vld [vmem:[#allocation8 + $0x6c] ss:$16 sps:$4 sm:$0xff]   ;;  %v3388_v15 = vld [vmem:[#allocation8 + $0x68] ss:$16 sps:$4 sm:$0xff]  }
  0x79   :  { %v131_v48 = vld [vmem:[#allocation5 + $0x78] sm:$0xff]  ;;  %v3396_v16 = vld [vmem:[#allocation8 + $0x8c] ss:$16 sps:$4 sm:$0xff]   ;;  %v3400_v23 = vld [vmem:[#allocation8 + $0xa8] ss:$16 sps:$4 sm:$0xff]  }
  0x7a   :  { %v135_v49 = vld [vmem:[#allocation5 + $0x98] sm:$0x11]  ;;  %v2924_v54 = vcombine.high %v127_v47, %v131_v48  ;;  %v2923_v58 = vcombine.low %v127_v47, %v131_v48  ;;  %v3402_v20 = vld [vmem:[#allocation8 + $0xac] ss:$16 sps:$4 sm:$0xff]   ;;  %v3412_v31 = vld [vmem:[#allocation8 + $0xe8] ss:$16 sps:$4 sm:$0xff]  }
  0x7b   :  { %319 = vmatpush1.bf16.msra.mxu1 %v291_v25  ;;  %405 = vmatpush1.bf16.msra.mxu0 %v303_v37  ;;  %v3381_v52 = vld [vmem:[#allocation8 + $0x44] ss:$16 sps:$4 sm:$0xff]   ;;  %v2932_v55 = vcombine.high %v135_v49, %v135_v49  ;;  %v3379_v56 = vld [vmem:[#allocation8 + $0x40] ss:$16 sps:$4 sm:$0xff]   ;;  %v2931_v59 = vcombine.low %v135_v49, %v135_v49  ;;  %v3408_v24 = vld [vmem:[#allocation8 + $0xcc] ss:$16 sps:$4 sm:$0xff]  }
  0x7c   :  { %357 = vmatprep.subr.bf16.mxu1 %v2912_v27  ;;  %2068 = vmatprep.subr.bf16.mxu0 %v3369_v38  ;;  %v3387_v57 = vld [vmem:[#allocation8 + $0x64] ss:$16 sps:$4 sm:$0xff]   ;;  %v3385_v61 = vld [vmem:[#allocation8 + $0x60] ss:$16 sps:$4 sm:$0xff]   ;;  %v3406_v27 = vld [vmem:[#allocation8 + $0xc8] ss:$16 sps:$4 sm:$0xff]  }
  0x7d   :  { %v312_v60 = vand.u32 %v2932_v55, %v4111_v10  ;;  %v3393_v62 = vld [vmem:[#allocation8 + $0x84] ss:$16 sps:$4 sm:$0xff]   ;;  %v309_v63 = vand.u32 %v2931_v59, %v4111_v10  ;;  %v3391_v2 = vld [vmem:[#allocation8 + $0x80] ss:$16 sps:$4 sm:$0xff]   ;;  %v3414_v28 = vld [vmem:[#allocation8 + $0xec] ss:$16 sps:$4 sm:$0xff]  }
  0x7e   :  { %2933 = vmatmul.mubr.msk.bf16.vlgmr.msra.gmra.mrb[0].mxu1 %vm283_vm1, %v4116_v33  ;;  %2935 = vmatmul.mubr.msk.bf16.vlgmr.msra.gmra.mrb[0].mxu0 %vm283_vm1, %v4116_v33  ;;  %v3399_v3 = vld [vmem:[#allocation8 + $0xa4] ss:$16 sps:$4 sm:$0xff]   ;;  %v3403_v9 = vld [vmem:[#allocation8 + $0xc0] ss:$16 sps:$4 sm:$0xff]   ;;  %v3420_v32 = vld [vmem:[#allocation8 + $0x10c] ss:$16 sps:$4 sm:$0xff]  }
  0x7f   :  { %358 = vmatpush1.bf16.msra.mxu1 %v2911_v34  ;;  %389 = vmatprep.mubr.bf16.mxu1 %v3971_v0  ;;  %v3405_v6 = vld [vmem:[#allocation8 + $0xc4] ss:$16 sps:$4 sm:$0xff]   ;;  %v3409_v13 = vld [vmem:[#allocation8 + $0xe0] ss:$16 sps:$4 sm:$0xff]   ;;  %v3426_v36 = vld [vmem:[#allocation8 + $0x12c] ss:$16 sps:$4 sm:$0xff]  }
  0x80   :  { %359 = vmatprep.subr.bf16.mxu1 %v2920_v35  ;;  %2069 = vmatpush1.bf16.msra.mxu0 %v3367_v44  ;;  %v3411_v10 = vld [vmem:[#allocation8 + $0xe4] ss:$16 sps:$4 sm:$0xff]   ;;  %v3415_v17 = vld [vmem:[#allocation8 + $0x100] ss:$16 sps:$4 sm:$0xff]   ;;  %v3418_v35 = vld [vmem:[#allocation8 + $0x108] ss:$16 sps:$4 sm:$0xff]  }
  0x81   :  { %2070 = vmatprep.subr.bf16.mxu0 %v3375_v45  ;;  %v3417_v14 = vld [vmem:[#allocation8 + $0x104] ss:$16 sps:$4 sm:$0xff]   ;;  %v3421_v21 = vld [vmem:[#allocation8 + $0x120] ss:$16 sps:$4 sm:$0xff]   ;;  %v3424_v38 = vld [vmem:[#allocation8 + $0x128] ss:$16 sps:$4 sm:$0xff]  }
  0x82   :  { %v3423_v18 = vld [vmem:[#allocation8 + $0x124] ss:$16 sps:$4 sm:$0xff]   ;;  %v3427_v25 = vld [vmem:[#allocation8 + $0x140] ss:$16 sps:$4 sm:$0xff]   ;;  %v3430_v40 = vld [vmem:[#allocation8 + $0x148] ss:$16 sps:$4 sm:$0xff]  }
  0x83   :  { %360 = vmatpush1.bf16.msra.mxu1 %v2919_v39  ;;  %v3429_v22 = vld [vmem:[#allocation8 + $0x144] ss:$16 sps:$4 sm:$0xff]   ;;  %v3433_v29 = vld [vmem:[#allocation8 + $0x160] ss:$16 sps:$4 sm:$0xff]   ;;  %v3432_v39 = vld [vmem:[#allocation8 + $0x14c] ss:$16 sps:$4 sm:$0xff]  }
  0x84   :  { %361 = vmatprep.subr.bf16.mxu1 %v300_v43  ;;  %2071 = vmatpush1.bf16.msra.mxu0 %v3373_v51  ;;  %v3435_v26 = vld [vmem:[#allocation8 + $0x164] ss:$16 sps:$4 sm:$0xff]   ;;  %v3445_v37 = vld [vmem:[#allocation8 + $0x1a0] ss:$16 sps:$4 sm:$0xff]   ;;  %v3438_v41 = vld [vmem:[#allocation8 + $0x16c] ss:$16 sps:$4 sm:$0xff]  }
  0x85   :  { %2072 = vmatprep.subr.bf16.mxu0 %v3381_v52  ;;  %v3441_v30 = vld [vmem:[#allocation8 + $0x184] ss:$16 sps:$4 sm:$0xff]   ;;  %v3436_v42 = vld [vmem:[#allocation8 + $0x168] ss:$16 sps:$4 sm:$0xff]   ;;  %v3444_v43 = vld [vmem:[#allocation8 + $0x18c] ss:$16 sps:$4 sm:$0xff]  }
  0x86   :  { %v3447_v34 = vld [vmem:[#allocation8 + $0x1a4] ss:$16 sps:$4 sm:$0xff]   ;;  %v3442_v44 = vld [vmem:[#allocation8 + $0x188] ss:$16 sps:$4 sm:$0xff]   ;;  %v3450_v45 = vld [vmem:[#allocation8 + $0x1ac] ss:$16 sps:$4 sm:$0xff]  }
  0x87   :  { %362 = vmatpush1.bf16.msra.mxu1 %v297_v46  ;;  %v3448_v46 = vld [vmem:[#allocation8 + $0x1a8] ss:$16 sps:$4 sm:$0xff]   ;;  %v3453_v47 = vld [vmem:[#allocation8 + $0x1c4] ss:$16 sps:$4 sm:$0xff]   ;;  %v3456_v48 = vld [vmem:[#allocation8 + $0x1cc] ss:$16 sps:$4 sm:$0xff]  }
  0x88   :  { %443 = vmatprep.subr.bf16.mxu1 %v2916_v50  ;;  %2073 = vmatpush1.bf16.msra.mxu0 %v3379_v56  ;;  %v3451_v49 = vld [vmem:[#allocation8 + $0x1c0] ss:$16 sps:$4 sm:$0xff]   ;;  %v3454_v50 = vld [vmem:[#allocation8 + $0x1c8] ss:$16 sps:$4 sm:$0xff]   ;;  %v3459_v51 = vld [vmem:[#allocation8 + $0x1e4] ss:$16 sps:$4 sm:$0xff]  }
  0x89   :  { %2074 = vmatprep.subr.bf16.mxu0 %v3387_v57  ;;  %v3462_v52 = vld [vmem:[#allocation8 + $0x1ec] ss:$16 sps:$4 sm:$0xff]   ;;  %v3465_v55 = vld [vmem:[#allocation8 + $0x204] ss:$16 sps:$4 sm:$0xff]   ;;  %v138_v57 = vlaneseq }
  0x8a   :  { %2934 = vmatmul.mubr.msk.bf16.vlgmr.msra.gmra.mrb[4].mxu1 %vm283_vm1, %v4116_v33  ;;  %v3468_v56 = vld [vmem:[#allocation8 + $0x20c] ss:$16 sps:$4 sm:$0xff]  }
  0x8b   :  { %444 = vmatpush1.bf16.msra.mxu1 %v2915_v53  ;;  %475 = vmatprep.mubr.bf16.mxu1 %v3971_v0  ;;  %v3397_v0 = vld [vmem:[#allocation8 + $0xa0] ss:$16 sps:$4 sm:$0xff]  }
  0x8c   :  { %445 = vmatprep.subr.bf16.mxu1 %v2924_v54  ;;  %2075 = vmatpush1.bf16.msra.mxu0 %v3385_v61  ;;  %v3457_v53 = vld [vmem:[#allocation8 + $0x1e0] ss:$16 sps:$4 sm:$0xff]   ;;  %v3460_v54 = vld [vmem:[#allocation8 + $0x1e8] ss:$16 sps:$4 sm:$0xff]  }
  0x8d   :  { %2076 = vmatprep.subr.bf16.mxu0 %v3393_v62 }
  0x8f   :  { %446 = vmatpush1.bf16.msra.mxu1 %v2923_v58  ;;  %v4133_v58 = vshrl.u32 %v138_v57, 7  ;;  %v3486_v57 = vld [vmem:[#allocation8 + $0x26c] ss:$16 sps:$4 sm:$0xff]  }
  0x90   :  { %447 = vmatprep.subr.bf16.mxu1 %v312_v60  ;;  %2077 = vmatpush1.bf16.msra.mxu0 %v3391_v2  ;;  %v4136_v60 = vld [vmem:[#allocation7] sm:$0xff] }
  0x91   :  { %2078 = vmatprep.subr.bf16.mxu0 %v3399_v3  ;;  %v140_v59 = vsub.s32 0, %v4133_v58  ;;  %v144_v61 = vsub.s32 1, %v4133_v58  ;;  %v160_v2 = vsub.s32 5, %v4133_v58 }
  0x93   :  { %448 = vmatpush1.bf16.msra.mxu1 %v309_v63  ;;  %v141_v62 = vrot.slane %v4136_v60, %v140_v59  ;;  %v145_v63 = vrot.slane %v4136_v60, %v144_v61 }
  0x94   :  { %2240 = vmatprep.subr.bf16.mxu1 %v3372_v1  ;;  %2079 = vmatpush1.bf16.msra.mxu0 %v3397_v0  ;;  %v156_v1 = vsub.s32 4, %v4133_v58 }
  0x95   :  { %2080 = vmatprep.subr.bf16.mxu0 %v3405_v6 }
  0x96   :  { %2936 = vmatmul.mubr.msk.bf16.vlgmr.msra.gmra.mrb[8].mxu1 %vm283_vm1, %v4116_v33  ;;  %v3439_v33 = vld [vmem:[#allocation8 + $0x180] ss:$16 sps:$4 sm:$0xff]  }
  0x97   :  { %2241 = vmatpush1.bf16.msra.mxu1 %v3370_v4 }
  0x98   :  { %2242 = vmatprep.subr.bf16.mxu1 %v3378_v5  ;;  %2081 = vmatpush1.bf16.msra.mxu0 %v3403_v9 }
  0x99   :  { %2082 = vmatprep.subr.bf16.mxu0 %v3411_v10  ;;  %v161_v10 = vrot.slane %v4136_v60, %v160_v2  ;;  %v3481_v2 = vld [vmem:[#allocation8 + $0x260] ss:$16 sps:$4 sm:$0xff]  }
  0x9b   :  { %2243 = vmatpush1.bf16.msra.mxu1 %v3376_v7  ;;  %v157_v7 = vrot.slane %v4136_v60, %v156_v1 }
  0x9c   :  { %2244 = vmatprep.subr.bf16.mxu1 %v3384_v8  ;;  %2083 = vmatpush1.bf16.msra.mxu0 %v3409_v13 }
  0x9d   :  { %2084 = vmatprep.subr.bf16.mxu0 %v3417_v14  ;;  %v148_v14 = vsub.s32 2, %v4133_v58 }
  0x9f   :  { %2245 = vmatpush1.bf16.msra.mxu1 %v3382_v11 }
  0xa0   :  { %2246 = vmatprep.subr.bf16.mxu1 %v3390_v12  ;;  %2085 = vmatpush1.bf16.msra.mxu0 %v3415_v17 }
  0xa1   :  { %2086 = vmatprep.subr.bf16.mxu0 %v3423_v18  ;;  %v152_v18 = vsub.s32 3, %v4133_v58 }
  0xa3   :  { %2247 = vmatpush1.bf16.msra.mxu1 %v3388_v15 }
  0xa4   :  { %2248 = vmatprep.subr.bf16.mxu1 %v3396_v16  ;;  %2087 = vmatpush1.bf16.msra.mxu0 %v3421_v21 }
  0xa5   :  { %2088 = vmatprep.subr.bf16.mxu0 %v3429_v22 }
  0xa7   :  { %2249 = vmatpush1.bf16.msra.mxu1 %v3394_v19 }
  0xa8   :  { %2250 = vmatprep.subr.bf16.mxu1 %v3402_v20  ;;  %2089 = vmatpush1.bf16.msra.mxu0 %v3427_v25  ;;  %v3463_v25 = vld [vmem:[#allocation8 + $0x200] ss:$16 sps:$4 sm:$0xff]  }
  0xa9   :  { %2090 = vmatprep.subr.bf16.mxu0 %v3435_v26  ;;  %v3466_v26 = vld [vmem:[#allocation8 + $0x208] ss:$16 sps:$4 sm:$0xff]  }
  0xab   :  { %2251 = vmatpush1.bf16.msra.mxu1 %v3400_v23 }
  0xac   :  { %2252 = vmatprep.subr.bf16.mxu1 %v3408_v24  ;;  %2091 = vmatpush1.bf16.msra.mxu0 %v3433_v29 }
  0xad   :  { %2092 = vmatprep.subr.bf16.mxu0 %v3441_v30  ;;  %v3471_v30 = vld [vmem:[#allocation8 + $0x224] ss:$16 sps:$4 sm:$0xff]  }
  0xaf   :  { %2253 = vmatpush1.bf16.msra.mxu1 %v3406_v27 }
  0xb0   :  { %2254 = vmatprep.subr.bf16.mxu1 %v3414_v28  ;;  %2093 = vmatpush1.bf16.msra.mxu0 %v3439_v33 }
  0xb1   :  { %2094 = vmatprep.subr.bf16.mxu0 %v3447_v34 }
  0xb3   :  { %2255 = vmatpush1.bf16.msra.mxu1 %v3412_v31  ;;  %v3474_v31 = vld [vmem:[#allocation8 + $0x22c] ss:$16 sps:$4 sm:$0xff]  }
  0xb4   :  { %2256 = vmatprep.subr.bf16.mxu1 %v3420_v32  ;;  %2095 = vmatpush1.bf16.msra.mxu0 %v3445_v37  ;;  %v149_v32 = vrot.slane %v4136_v60, %v148_v14 }
  0xb5   :  { %2096 = vmatprep.subr.bf16.mxu0 %v3453_v47 }
  0xb7   :  { %2257 = vmatpush1.bf16.msra.mxu1 %v3418_v35  ;;  %v153_v35 = vrot.slane %v4136_v60, %v152_v18 }
  0xb8   :  { %2258 = vmatprep.subr.bf16.mxu1 %v3426_v36  ;;  %2097 = vmatpush1.bf16.msra.mxu0 %v3451_v49 }
  0xb9   :  { %2098 = vmatprep.subr.bf16.mxu0 %v3459_v51 }
  0xbb   :  { %2259 = vmatpush1.bf16.msra.mxu1 %v3424_v38  ;;  %v3469_v38 = vld [vmem:[#allocation8 + $0x220] ss:$16 sps:$4 sm:$0xff]  }
  0xbc   :  { %2260 = vmatprep.subr.bf16.mxu1 %v3432_v39  ;;  %2099 = vmatpush1.bf16.msra.mxu0 %v3457_v53  ;;  %v3472_v39 = vld [vmem:[#allocation8 + $0x228] ss:$16 sps:$4 sm:$0xff]  }
  0xbd   :  { %2111 = vmatprep.subr.bf16.mxu0 %v3465_v55  ;;  %v3478_v53 = vld [vmem:[#allocation8 + $0x248] ss:$16 sps:$4 sm:$0xff]  }
  0xbf   :  { %2261 = vmatpush1.bf16.msra.mxu1 %v3430_v40 }
  0xc0   :  { %2262 = vmatprep.subr.bf16.mxu1 %v3438_v41 }
  0xc3   :  { %2263 = vmatpush1.bf16.msra.mxu1 %v3436_v42  ;;  %v3477_v42 = vld [vmem:[#allocation8 + $0x244] ss:$16 sps:$4 sm:$0xff]  }
  0xc4   :  { %2264 = vmatprep.subr.bf16.mxu1 %v3444_v43  ;;  %v3480_v43 = vld [vmem:[#allocation8 + $0x24c] ss:$16 sps:$4 sm:$0xff]  }
  0xc7   :  { %2265 = vmatpush1.bf16.msra.mxu1 %v3442_v44 }
  0xc8   :  { %2266 = vmatprep.subr.bf16.mxu1 %v3450_v45 }
  0xcb   :  { %2267 = vmatpush1.bf16.msra.mxu1 %v3448_v46 }
  0xcc   :  { %2268 = vmatprep.subr.bf16.mxu1 %v3456_v48 }
  0xcf   :  { %2269 = vmatpush1.bf16.msra.mxu1 %v3454_v50 }
  0xd0   :  { %2270 = vmatprep.subr.bf16.mxu1 %v3462_v52  ;;  %v3475_v52 = vld [vmem:[#allocation8 + $0x240] ss:$16 sps:$4 sm:$0xff]  }
  0xd3   :  { %2271 = vmatpush1.bf16.msra.mxu1 %v3460_v54 }
  0xd4   :  { %2283 = vmatprep.subr.bf16.mxu1 %v3468_v56  ;;  %v3483_v56 = vld [vmem:[#allocation8 + $0x264] ss:$16 sps:$4 sm:$0xff]  }
 0x151   :  { %v348_v3 = vpop.f32.mrb[0].mxu1  ;;  %v434_v15 = vpop.f32.mrb[0].mxu0 }
 0x152   :  { %v349_v4 = vadd.f32 %v348_v3, %v141_v62  ;;  %v350_v5 = vpop.f32.mrb[1].mxu1  ;;  %v435_v19 = vadd.f32 %v434_v15, %v157_v7  ;;  %v436_v20 = vpop.f32.mrb[1].mxu0  ;;  %v3484_v3 = vld [vmem:[#allocation8 + $0x268] ss:$16 sps:$4 sm:$0xff]   ;;  %v168_v15 = vsub.s32 7, %v4133_v58 }
 0x153   :  { %v351_v0 = vadd.f32 %v350_v5, %v145_v63  ;;  %v352_v6 = vpop.f32.mrb[2].mxu1  ;;  %v437_v22 = vadd.f32 %v436_v20, %v161_v10  ;;  %v438_v23 = vpop.f32.mrb[2].mxu0  ;;  %v3489_v5 = vld [vmem:[#allocation8 + $0x284] ss:$16 sps:$4 sm:$0xff]  }
 0x154   :  { %v353_v8 = vadd.f32 %v352_v6, %v141_v62  ;;  %v354_v9 = vpop.f32.mrb[3].mxu1  ;;  %v486_v12 = vmax.f32 %v349_v4, 0.0  ;;  %v490_v27 = vmax.f32 %v435_v19, 0.0  ;;  %v439_v28 = vadd.f32 %v438_v23, %v157_v7  ;;  %v440_v29 = vpop.f32.mrb[3].mxu0  ;;  %v3487_v6 = vld [vmem:[#allocation8 + $0x280] ss:$16 sps:$4 sm:$0xff]  }
 0x155   :  { %v355_v11 = vadd.f32 %v354_v9, %v145_v63  ;;  %v487_v16 = vmax.f32 %v351_v0, 0.0  ;;  %v491_v33 = vmax.f32 %v437_v22, 0.0  ;;  %v441_v34 = vadd.f32 %v440_v29, %v161_v10  ;;  %v3492_v0 = vld [vmem:[#allocation8 + $0x28c] ss:$16 sps:$4 sm:$0xff]   ;;  %v3490_v7 = vld [vmem:[#allocation8 + $0x288] ss:$16 sps:$4 sm:$0xff]  }
 0x156   :  { %v494_v13 = vmax.f32 %v353_v8, 0.0  ;;  %v498_v36 = vmax.f32 %v439_v28, 0.0  ;;  %v3495_v8 = vld [vmem:[#allocation8 + $0x2a4] ss:$16 sps:$4 sm:$0xff]   ;;  %v3498_v9 = vld [vmem:[#allocation8 + $0x2ac] ss:$16 sps:$4 sm:$0xff]  }
 0x157   :  { %v495_v17 = vmax.f32 %v355_v11, 0.0  ;;  %v499_v37 = vmax.f32 %v441_v34, 0.0  ;;  %v3493_v10 = vld [vmem:[#allocation8 + $0x2a0] ss:$16 sps:$4 sm:$0xff]   ;;  %v3496_v11 = vld [vmem:[#allocation8 + $0x2a8] ss:$16 sps:$4 sm:$0xff]  }
 0x158   :  { %v502_v21 = vpack.c.bf16 %v494_v13, %v486_v12  ;;  %v4157_v41 = vpack.c.bf16 %v498_v36, %v490_v27  ;;  %v164_v12 = vsub.s32 6, %v4133_v58  ;;  %v3499_v23 = vld [vmem:[#allocation8 + $0x2c0] ss:$16 sps:$4 sm:$0xff]   ;;  %v3507_v29 = vld [vmem:[#allocation8 + $0x2e4] ss:$16 sps:$4 sm:$0xff]  }
 0x159   :  { %v503_v24 = vpack.c.bf16 %v495_v17, %v487_v16  ;;  %v4159_v46 = vpack.c.bf16 %v499_v37, %v491_v33  ;;  %v3501_v16 = vld [vmem:[#allocation8 + $0x2c4] ss:$16 sps:$4 sm:$0xff]   ;;  %v3504_v17 = vld [vmem:[#allocation8 + $0x2cc] ss:$16 sps:$4 sm:$0xff]   ;;  %v3508_v36 = vld [vmem:[#allocation8 + $0x2e8] ss:$16 sps:$4 sm:$0xff]  }
 0x15a   :  { %v165_v20 = vrot.slane %v4136_v60, %v164_v12  ;;  %v3553_v12 = vld [vmem:[#allocation8 + $0x3e0] ss:$16 sps:$4 sm:$0xff]  }
 0x15b   :  { %2100 = vmatprep.mubr.bf16.mxu0 %v503_v24  ;;  %2272 = vmatprep.mubr.bf16.mxu1 %v503_v24  ;;  %v3502_v24 = vld [vmem:[#allocation8 + $0x2c8] ss:$16 sps:$4 sm:$0xff]  }
 0x15c   :  { %2101 = vmatmul.mubr.bf16.vlgmr.msra.gmra.mrb[4].mxu0 %v502_v21  ;;  %2273 = vmatmul.mubr.bf16.vlgmr.msra.gmra.mrb[12].mxu1 %v502_v21  ;;  %v169_v21 = vrot.slane %v4136_v60, %v168_v15  ;;  %v3505_v60 = vld [vmem:[#allocation8 + $0x2e0] ss:$16 sps:$4 sm:$0xff]   ;;  %v3561_v15 = vld [vmem:[#allocation8 + $0x404] ss:$16 sps:$4 sm:$0xff]  }
 0x15d   :  { %2112 = vmatpush1.bf16.msra.mxu0 %v3463_v25  ;;  %2284 = vmatpush1.bf16.msra.mxu1 %v3466_v26  ;;  %v391_v40 = vpop.f32.mrb[4].mxu1 }
 0x15e   :  { %2113 = vmatprep.subr.bf16.mxu0 %v3471_v30  ;;  %2285 = vmatprep.subr.bf16.mxu1 %v3474_v31  ;;  %v392_v44 = vadd.f32 %v391_v40, %v149_v32  ;;  %v393_v45 = vpop.f32.mrb[5].mxu1  ;;  %v3510_v30 = vld [vmem:[#allocation8 + $0x2ec] ss:$16 sps:$4 sm:$0xff]  }
 0x15f   :  { %v394_v47 = vadd.f32 %v393_v45, %v153_v35  ;;  %v395_v48 = vpop.f32.mrb[6].mxu1  ;;  %v3522_v45 = vld [vmem:[#allocation8 + $0x32c] ss:$16 sps:$4 sm:$0xff]  }
 0x160   :  { %v488_v49 = vmax.f32 %v392_v44, 0.0  ;;  %v396_v50 = vadd.f32 %v395_v48, %v149_v32  ;;  %v397_v51 = vpop.f32.mrb[7].mxu1  ;;  %v3519_v44 = vld [vmem:[#allocation8 + $0x324] ss:$16 sps:$4 sm:$0xff]   ;;  %v3520_v48 = vld [vmem:[#allocation8 + $0x328] ss:$16 sps:$4 sm:$0xff]  }
 0x161   :  { %2114 = vmatpush1.bf16.msra.mxu0 %v3469_v38  ;;  %2286 = vmatpush1.bf16.msra.mxu1 %v3472_v39  ;;  %v489_v54 = vmax.f32 %v394_v47, 0.0  ;;  %v398_v55 = vadd.f32 %v397_v51, %v153_v35  ;;  %v3513_v38 = vld [vmem:[#allocation8 + $0x304] ss:$16 sps:$4 sm:$0xff]   ;;  %v3516_v39 = vld [vmem:[#allocation8 + $0x30c] ss:$16 sps:$4 sm:$0xff]  }
 0x162   :  { %2115 = vmatprep.subr.bf16.mxu0 %v3477_v42  ;;  %2287 = vmatprep.subr.bf16.mxu1 %v3480_v43  ;;  %v496_v62 = vmax.f32 %v396_v50, 0.0  ;;  %v3511_v42 = vld [vmem:[#allocation8 + $0x300] ss:$16 sps:$4 sm:$0xff]   ;;  %v3514_v43 = vld [vmem:[#allocation8 + $0x308] ss:$16 sps:$4 sm:$0xff]  }
 0x163   :  { %v497_v63 = vmax.f32 %v398_v55, 0.0  ;;  %v3517_v47 = vld [vmem:[#allocation8 + $0x320] ss:$16 sps:$4 sm:$0xff]   ;;  %v3528_v50 = vld [vmem:[#allocation8 + $0x34c] ss:$16 sps:$4 sm:$0xff]  }
 0x164   :  { %v4161_v1 = vpack.c.bf16 %v496_v62, %v488_v49  ;;  %v3525_v49 = vld [vmem:[#allocation8 + $0x344] ss:$16 sps:$4 sm:$0xff]   ;;  %v3523_v51 = vld [vmem:[#allocation8 + $0x340] ss:$16 sps:$4 sm:$0xff]   ;;  %v3540_v62 = vld [vmem:[#allocation8 + $0x38c] ss:$16 sps:$4 sm:$0xff]  }
 0x165   :  { %2116 = vmatpush1.bf16.msra.mxu0 %v3475_v52  ;;  %2288 = vmatpush1.bf16.msra.mxu1 %v3478_v53  ;;  %v505_v4 = vpack.c.bf16 %v497_v63, %v489_v54  ;;  %v3526_v52 = vld [vmem:[#allocation8 + $0x348] ss:$16 sps:$4 sm:$0xff]   ;;  %v3531_v53 = vld [vmem:[#allocation8 + $0x364] ss:$16 sps:$4 sm:$0xff]   ;;  %v3534_v54 = vld [vmem:[#allocation8 + $0x36c] ss:$16 sps:$4 sm:$0xff]  }
 0x166   :  { %2117 = vmatprep.subr.bf16.mxu0 %v3483_v56  ;;  %2289 = vmatprep.subr.bf16.mxu1 %v3486_v57  ;;  %v3529_v55 = vld [vmem:[#allocation8 + $0x360] ss:$16 sps:$4 sm:$0xff]   ;;  %v3532_v56 = vld [vmem:[#allocation8 + $0x368] ss:$16 sps:$4 sm:$0xff]   ;;  %v3537_v57 = vld [vmem:[#allocation8 + $0x384] ss:$16 sps:$4 sm:$0xff]  }
 0x167   :  { %2143 = vmatprep.mubr.bf16.mxu0 %v505_v4  ;;  %2315 = vmatprep.mubr.bf16.mxu1 %v505_v4  ;;  %v3535_v63 = vld [vmem:[#allocation8 + $0x380] ss:$16 sps:$4 sm:$0xff]   ;;  %v3546_v4 = vld [vmem:[#allocation8 + $0x3ac] ss:$16 sps:$4 sm:$0xff]  }
 0x169   :  { %2118 = vmatpush1.bf16.msra.mxu0 %v3481_v2  ;;  %2290 = vmatpush1.bf16.msra.mxu1 %v3484_v3  ;;  %v477_v13 = vpop.f32.mrb[8].mxu1  ;;  %v3538_v2 = vld [vmem:[#allocation8 + $0x388] ss:$16 sps:$4 sm:$0xff]   ;;  %v3543_v3 = vld [vmem:[#allocation8 + $0x3a4] ss:$16 sps:$4 sm:$0xff]  }
 0x16a   :  { %2119 = vmatprep.subr.bf16.mxu0 %v3489_v5  ;;  %2291 = vmatprep.subr.bf16.mxu1 %v3492_v0  ;;  %v479_v19 = vpop.f32.mrb[9].mxu1  ;;  %v478_v25 = vadd.f32 %v477_v13, %v165_v20  ;;  %v3541_v5 = vld [vmem:[#allocation8 + $0x3a0] ss:$16 sps:$4 sm:$0xff]   ;;  %v3544_v0 = vld [vmem:[#allocation8 + $0x3a8] ss:$16 sps:$4 sm:$0xff]  }
 0x16b   :  { %v481_v22 = vpop.f32.mrb[10].mxu1  ;;  %v480_v26 = vadd.f32 %v479_v19, %v169_v21  ;;  %v3556_v13 = vld [vmem:[#allocation8 + $0x3e8] ss:$16 sps:$4 sm:$0xff]  }
 0x16c   :  { %v482_v27 = vadd.f32 %v481_v22, %v165_v20  ;;  %v483_v28 = vpop.f32.mrb[11].mxu1  ;;  %v492_v32 = vmax.f32 %v478_v25, 0.0  ;;  %v3562_v19 = vld [vmem:[#allocation8 + $0x408] ss:$16 sps:$4 sm:$0xff]   ;;  %v3567_v20 = vld [vmem:[#allocation8 + $0x424] ss:$16 sps:$4 sm:$0xff]  }
 0x16d   :  { %2120 = vmatpush1.bf16.msra.mxu0 %v3487_v6  ;;  %2292 = vmatpush1.bf16.msra.mxu1 %v3490_v7  ;;  %v484_v31 = vadd.f32 %v483_v28, %v169_v21  ;;  %v493_v33 = vmax.f32 %v480_v26, 0.0  ;;  %v3549_v6 = vld [vmem:[#allocation8 + $0x3c4] ss:$16 sps:$4 sm:$0xff]   ;;  %v3552_v7 = vld [vmem:[#allocation8 + $0x3cc] ss:$16 sps:$4 sm:$0xff]  }
 0x16e   :  { %2121 = vmatprep.subr.bf16.mxu0 %v3495_v8  ;;  %2293 = vmatprep.subr.bf16.mxu1 %v3498_v9  ;;  %v500_v34 = vmax.f32 %v482_v27, 0.0  ;;  %v3547_v8 = vld [vmem:[#allocation8 + $0x3c0] ss:$16 sps:$4 sm:$0xff]   ;;  %v3550_v9 = vld [vmem:[#allocation8 + $0x3c8] ss:$16 sps:$4 sm:$0xff]  }
 0x16f   :  { %v501_v35 = vmax.f32 %v484_v31, 0.0  ;;  %v3570_v21 = vld [vmem:[#allocation8 + $0x42c] ss:$16 sps:$4 sm:$0xff]   ;;  %v3565_v22 = vld [vmem:[#allocation8 + $0x420] ss:$16 sps:$4 sm:$0xff]  }
 0x170   :  { %v4167_v37 = vpack.c.bf16 %v500_v34, %v492_v32  ;;  %v3576_v25 = vld [vmem:[#allocation8 + $0x44c] ss:$16 sps:$4 sm:$0xff]   ;;  %v3571_v26 = vld [vmem:[#allocation8 + $0x440] ss:$16 sps:$4 sm:$0xff]   ;;  %v3574_v27 = vld [vmem:[#allocation8 + $0x448] ss:$16 sps:$4 sm:$0xff]  }
 0x171   :  { %2122 = vmatpush1.bf16.msra.mxu0 %v3493_v10  ;;  %2294 = vmatpush1.bf16.msra.mxu1 %v3496_v11  ;;  %v4169_v40 = vpack.c.bf16 %v501_v35, %v493_v33  ;;  %v3555_v10 = vld [vmem:[#allocation8 + $0x3e4] ss:$16 sps:$4 sm:$0xff]   ;;  %v3558_v11 = vld [vmem:[#allocation8 + $0x3ec] ss:$16 sps:$4 sm:$0xff]   ;;  %v3583_v33 = vld [vmem:[#allocation8 + $0x480] ss:$16 sps:$4 sm:$0xff]  }
 0x172   :  { %2123 = vmatprep.subr.bf16.mxu0 %v3501_v16  ;;  %2295 = vmatprep.subr.bf16.mxu1 %v3504_v17  ;;  %v3564_v16 = vld [vmem:[#allocation8 + $0x40c] ss:$16 sps:$4 sm:$0xff]   ;;  %v3559_v17 = vld [vmem:[#allocation8 + $0x400] ss:$16 sps:$4 sm:$0xff]   ;;  %v3579_v28 = vld [vmem:[#allocation8 + $0x464] ss:$16 sps:$4 sm:$0xff]  }
 0x173   :  { %v3585_v31 = vld [vmem:[#allocation8 + $0x484] ss:$16 sps:$4 sm:$0xff]   ;;  %v3588_v32 = vld [vmem:[#allocation8 + $0x48c] ss:$16 sps:$4 sm:$0xff]  }
 0x174   :  { %v3591_v34 = vld [vmem:[#allocation8 + $0x4a4] ss:$16 sps:$4 sm:$0xff]   ;;  %v3594_v35 = vld [vmem:[#allocation8 + $0x4ac] ss:$16 sps:$4 sm:$0xff]  }
 0x175   :  { %2124 = vmatpush1.bf16.msra.mxu0 %v3499_v23  ;;  %2296 = vmatpush1.bf16.msra.mxu1 %v3502_v24  ;;  %v3568_v23 = vld [vmem:[#allocation8 + $0x428] ss:$16 sps:$4 sm:$0xff]   ;;  %v3573_v24 = vld [vmem:[#allocation8 + $0x444] ss:$16 sps:$4 sm:$0xff]  }
 0x176   :  { %2125 = vmatprep.subr.bf16.mxu0 %v3507_v29  ;;  %2297 = vmatprep.subr.bf16.mxu1 %v3510_v30  ;;  %v3577_v29 = vld [vmem:[#allocation8 + $0x460] ss:$16 sps:$4 sm:$0xff]   ;;  %v3580_v30 = vld [vmem:[#allocation8 + $0x468] ss:$16 sps:$4 sm:$0xff]  }
 0x179   :  { %2126 = vmatpush1.bf16.msra.mxu0 %v3505_v60  ;;  %2298 = vmatpush1.bf16.msra.mxu1 %v3508_v36  ;;  %v3589_v60 = vld [vmem:[#allocation8 + $0x4a0] ss:$16 sps:$4 sm:$0xff]   ;;  %v3592_v36 = vld [vmem:[#allocation8 + $0x4a8] ss:$16 sps:$4 sm:$0xff]  }
 0x17a   :  { %2127 = vmatprep.subr.bf16.mxu0 %v3513_v38  ;;  %2299 = vmatprep.subr.bf16.mxu1 %v3516_v39  ;;  %v3597_v38 = vld [vmem:[#allocation8 + $0x4c4] ss:$16 sps:$4 sm:$0xff]   ;;  %v3600_v39 = vld [vmem:[#allocation8 + $0x4cc] ss:$16 sps:$4 sm:$0xff]  }
 0x17d   :  { %2128 = vmatpush1.bf16.msra.mxu0 %v3511_v42  ;;  %2300 = vmatpush1.bf16.msra.mxu1 %v3514_v43  ;;  %v3595_v42 = vld [vmem:[#allocation8 + $0x4c0] ss:$16 sps:$4 sm:$0xff]   ;;  %v3598_v43 = vld [vmem:[#allocation8 + $0x4c8] ss:$16 sps:$4 sm:$0xff]  }
 0x17e   :  { %2129 = vmatprep.subr.bf16.mxu0 %v3519_v44  ;;  %2301 = vmatprep.subr.bf16.mxu1 %v3522_v45  ;;  %v3603_v44 = vld [vmem:[#allocation8 + $0x4e4] ss:$16 sps:$4 sm:$0xff]   ;;  %v3606_v45 = vld [vmem:[#allocation8 + $0x4ec] ss:$16 sps:$4 sm:$0xff]  }
 0x181   :  { %2130 = vmatpush1.bf16.msra.mxu0 %v3517_v47  ;;  %2302 = vmatpush1.bf16.msra.mxu1 %v3520_v48  ;;  %v3601_v47 = vld [vmem:[#allocation8 + $0x4e0] ss:$16 sps:$4 sm:$0xff]   ;;  %v3604_v48 = vld [vmem:[#allocation8 + $0x4e8] ss:$16 sps:$4 sm:$0xff]  }
 0x182   :  { %2131 = vmatprep.subr.bf16.mxu0 %v3525_v49  ;;  %2303 = vmatprep.subr.bf16.mxu1 %v3528_v50  ;;  %v3609_v49 = vld [vmem:[#allocation8 + $0x504] ss:$16 sps:$4 sm:$0xff]   ;;  %v3612_v50 = vld [vmem:[#allocation8 + $0x50c] ss:$16 sps:$4 sm:$0xff]  }
 0x185   :  { %2132 = vmatpush1.bf16.msra.mxu0 %v3523_v51  ;;  %2304 = vmatpush1.bf16.msra.mxu1 %v3526_v52  ;;  %v3607_v51 = vld [vmem:[#allocation8 + $0x500] ss:$16 sps:$4 sm:$0xff]   ;;  %v3610_v52 = vld [vmem:[#allocation8 + $0x508] ss:$16 sps:$4 sm:$0xff]  }
 0x186   :  { %2133 = vmatprep.subr.bf16.mxu0 %v3531_v53  ;;  %2305 = vmatprep.subr.bf16.mxu1 %v3534_v54  ;;  %v3615_v53 = vld [vmem:[#allocation8 + $0x524] ss:$16 sps:$4 sm:$0xff]   ;;  %v3618_v54 = vld [vmem:[#allocation8 + $0x52c] ss:$16 sps:$4 sm:$0xff]  }
 0x189   :  { %2134 = vmatpush1.bf16.msra.mxu0 %v3529_v55  ;;  %2306 = vmatpush1.bf16.msra.mxu1 %v3532_v56  ;;  %v3613_v55 = vld [vmem:[#allocation8 + $0x520] ss:$16 sps:$4 sm:$0xff]   ;;  %v3616_v56 = vld [vmem:[#allocation8 + $0x528] ss:$16 sps:$4 sm:$0xff]  }
 0x18a   :  { %2135 = vmatprep.subr.bf16.mxu0 %v3537_v57  ;;  %2307 = vmatprep.subr.bf16.mxu1 %v3540_v62  ;;  %v3621_v57 = vld [vmem:[#allocation8 + $0x544] ss:$16 sps:$4 sm:$0xff]   ;;  %v3624_v62 = vld [vmem:[#allocation8 + $0x54c] ss:$16 sps:$4 sm:$0xff]  }
 0x18d   :  { %2136 = vmatpush1.bf16.msra.mxu0 %v3535_v63  ;;  %2308 = vmatpush1.bf16.msra.mxu1 %v3538_v2  ;;  %v3619_v63 = vld [vmem:[#allocation8 + $0x540] ss:$16 sps:$4 sm:$0xff]   ;;  %v3622_v2 = vld [vmem:[#allocation8 + $0x548] ss:$16 sps:$4 sm:$0xff]  }
 0x18e   :  { %2137 = vmatprep.subr.bf16.mxu0 %v3543_v3  ;;  %2309 = vmatprep.subr.bf16.mxu1 %v3546_v4  ;;  %v3627_v3 = vld [vmem:[#allocation8 + $0x564] ss:$16 sps:$4 sm:$0xff]   ;;  %v3630_v4 = vld [vmem:[#allocation8 + $0x56c] ss:$16 sps:$4 sm:$0xff]  }
 0x191   :  { %2138 = vmatpush1.bf16.msra.mxu0 %v3541_v5  ;;  %2310 = vmatpush1.bf16.msra.mxu1 %v3544_v0  ;;  %v3625_v5 = vld [vmem:[#allocation8 + $0x560] ss:$16 sps:$4 sm:$0xff]   ;;  %v3628_v0 = vld [vmem:[#allocation8 + $0x568] ss:$16 sps:$4 sm:$0xff]  }
 0x192   :  { %2139 = vmatprep.subr.bf16.mxu0 %v3549_v6  ;;  %2311 = vmatprep.subr.bf16.mxu1 %v3552_v7  ;;  %v3633_v6 = vld [vmem:[#allocation8 + $0x584] ss:$16 sps:$4 sm:$0xff]   ;;  %v3636_v7 = vld [vmem:[#allocation8 + $0x58c] ss:$16 sps:$4 sm:$0xff]  }
 0x195   :  { %2140 = vmatpush1.bf16.msra.mxu0 %v3547_v8  ;;  %2312 = vmatpush1.bf16.msra.mxu1 %v3550_v9  ;;  %v3631_v8 = vld [vmem:[#allocation8 + $0x580] ss:$16 sps:$4 sm:$0xff]   ;;  %v3634_v9 = vld [vmem:[#allocation8 + $0x588] ss:$16 sps:$4 sm:$0xff]  }
 0x196   :  { %2141 = vmatprep.subr.bf16.mxu0 %v3555_v10  ;;  %2313 = vmatprep.subr.bf16.mxu1 %v3558_v11  ;;  %v3639_v10 = vld [vmem:[#allocation8 + $0x5a4] ss:$16 sps:$4 sm:$0xff]   ;;  %v3642_v11 = vld [vmem:[#allocation8 + $0x5ac] ss:$16 sps:$4 sm:$0xff]  }
 0x199   :  { %2142 = vmatpush1.bf16.msra.mxu0 %v3553_v12  ;;  %2314 = vmatpush1.bf16.msra.mxu1 %v3556_v13  ;;  %v3637_v12 = vld [vmem:[#allocation8 + $0x5a0] ss:$16 sps:$4 sm:$0xff]   ;;  %v3640_v13 = vld [vmem:[#allocation8 + $0x5a8] ss:$16 sps:$4 sm:$0xff]  }
 0x19a   :  { %2154 = vmatprep.subr.bf16.mxu0 %v3561_v15  ;;  %2326 = vmatprep.subr.bf16.mxu1 %v3564_v16  ;;  %v3645_v15 = vld [vmem:[#allocation8 + $0x5c4] ss:$16 sps:$4 sm:$0xff]   ;;  %v3648_v16 = vld [vmem:[#allocation8 + $0x5cc] ss:$16 sps:$4 sm:$0xff]  }
 0x19c   :  { %2144 = vmatmul.mubr.bf16.vlgmr.msra.gmra.mrb[4].mxu0 %v4161_v1  ;;  %2316 = vmatmul.mubr.bf16.vlgmr.msra.gmra.mrb[12].mxu1 %v4161_v1  ;;  %v3582_v1 = vld [vmem:[#allocation8 + $0x46c] ss:$16 sps:$4 sm:$0xff]  }
 0x19d   :  { %2155 = vmatpush1.bf16.msra.mxu0 %v3559_v17  ;;  %2327 = vmatpush1.bf16.msra.mxu1 %v3562_v19  ;;  %v3643_v17 = vld [vmem:[#allocation8 + $0x5c0] ss:$16 sps:$4 sm:$0xff]   ;;  %v3646_v19 = vld [vmem:[#allocation8 + $0x5c8] ss:$16 sps:$4 sm:$0xff]  }
 0x19e   :  { %2156 = vmatprep.subr.bf16.mxu0 %v3567_v20  ;;  %2328 = vmatprep.subr.bf16.mxu1 %v3570_v21  ;;  %v3651_v20 = vld [vmem:[#allocation8 + $0x5e4] ss:$16 sps:$4 sm:$0xff]   ;;  %v3654_v21 = vld [vmem:[#allocation8 + $0x5ec] ss:$16 sps:$4 sm:$0xff]  }
 0x19f   :  { %2186 = vmatprep.mubr.bf16.mxu0 %v4159_v46  ;;  %2358 = vmatprep.mubr.bf16.mxu1 %v4159_v46  ;;  %v3586_v46 = vld [vmem:[#allocation8 + $0x488] ss:$16 sps:$4 sm:$0xff]  }
 0x1a1   :  { %2157 = vmatpush1.bf16.msra.mxu0 %v3565_v22  ;;  %2329 = vmatpush1.bf16.msra.mxu1 %v3568_v23  ;;  %v3649_v22 = vld [vmem:[#allocation8 + $0x5e0] ss:$16 sps:$4 sm:$0xff]   ;;  %v3652_v23 = vld [vmem:[#allocation8 + $0x5e8] ss:$16 sps:$4 sm:$0xff]  }
 0x1a2   :  { %2158 = vmatprep.subr.bf16.mxu0 %v3573_v24  ;;  %2330 = vmatprep.subr.bf16.mxu1 %v3576_v25  ;;  %v3657_v24 = vld [vmem:[#allocation8 + $0x604] ss:$16 sps:$4 sm:$0xff]   ;;  %v3660_v25 = vld [vmem:[#allocation8 + $0x60c] ss:$16 sps:$4 sm:$0xff]  }
 0x1a5   :  { %2159 = vmatpush1.bf16.msra.mxu0 %v3571_v26  ;;  %2331 = vmatpush1.bf16.msra.mxu1 %v3574_v27  ;;  %v3655_v26 = vld [vmem:[#allocation8 + $0x600] ss:$16 sps:$4 sm:$0xff]   ;;  %v3658_v27 = vld [vmem:[#allocation8 + $0x608] ss:$16 sps:$4 sm:$0xff]  }
 0x1a6   :  { %2160 = vmatprep.subr.bf16.mxu0 %v3579_v28  ;;  %2332 = vmatprep.subr.bf16.mxu1 %v3582_v1  ;;  %v3663_v28 = vld [vmem:[#allocation8 + $0x624] ss:$16 sps:$4 sm:$0xff]   ;;  %v3666_v1 = vld [vmem:[#allocation8 + $0x62c] ss:$16 sps:$4 sm:$0xff]  }
 0x1a9   :  { %2161 = vmatpush1.bf16.msra.mxu0 %v3577_v29  ;;  %2333 = vmatpush1.bf16.msra.mxu1 %v3580_v30  ;;  %v3661_v29 = vld [vmem:[#allocation8 + $0x620] ss:$16 sps:$4 sm:$0xff]   ;;  %v3664_v30 = vld [vmem:[#allocation8 + $0x628] ss:$16 sps:$4 sm:$0xff]  }
 0x1aa   :  { %2162 = vmatprep.subr.bf16.mxu0 %v3585_v31  ;;  %2334 = vmatprep.subr.bf16.mxu1 %v3588_v32  ;;  %v3669_v31 = vld [vmem:[#allocation8 + $0x644] ss:$16 sps:$4 sm:$0xff]   ;;  %v3672_v32 = vld [vmem:[#allocation8 + $0x64c] ss:$16 sps:$4 sm:$0xff]  }
 0x1ad   :  { %2163 = vmatpush1.bf16.msra.mxu0 %v3583_v33  ;;  %2335 = vmatpush1.bf16.msra.mxu1 %v3586_v46  ;;  %v3667_v33 = vld [vmem:[#allocation8 + $0x640] ss:$16 sps:$4 sm:$0xff]   ;;  %v3670_v46 = vld [vmem:[#allocation8 + $0x648] ss:$16 sps:$4 sm:$0xff]  }
 0x1ae   :  { %2164 = vmatprep.subr.bf16.mxu0 %v3591_v34  ;;  %2336 = vmatprep.subr.bf16.mxu1 %v3594_v35  ;;  %v3675_v34 = vld [vmem:[#allocation8 + $0x664] ss:$16 sps:$4 sm:$0xff]   ;;  %v3673_v35 = vld [vmem:[#allocation8 + $0x660] ss:$16 sps:$4 sm:$0xff]  }
 0x1b1   :  { %2165 = vmatpush1.bf16.msra.mxu0 %v3589_v60  ;;  %2337 = vmatpush1.bf16.msra.mxu1 %v3592_v36  ;;  %v3676_v60 = vld [vmem:[#allocation8 + $0x668] ss:$16 sps:$4 sm:$0xff]   ;;  %v3681_v36 = vld [vmem:[#allocation8 + $0x684] ss:$16 sps:$4 sm:$0xff]  }
 0x1b2   :  { %2166 = vmatprep.subr.bf16.mxu0 %v3597_v38  ;;  %2338 = vmatprep.subr.bf16.mxu1 %v3600_v39  ;;  %v3684_v38 = vld [vmem:[#allocation8 + $0x68c] ss:$16 sps:$4 sm:$0xff]   ;;  %v3679_v39 = vld [vmem:[#allocation8 + $0x680] ss:$16 sps:$4 sm:$0xff]  }
 0x1b5   :  { %2167 = vmatpush1.bf16.msra.mxu0 %v3595_v42  ;;  %2339 = vmatpush1.bf16.msra.mxu1 %v3598_v43  ;;  %v3687_v42 = vld [vmem:[#allocation8 + $0x6a4] ss:$16 sps:$4 sm:$0xff]   ;;  %v3690_v43 = vld [vmem:[#allocation8 + $0x6ac] ss:$16 sps:$4 sm:$0xff]  }
 0x1b6   :  { %2168 = vmatprep.subr.bf16.mxu0 %v3603_v44  ;;  %2340 = vmatprep.subr.bf16.mxu1 %v3606_v45  ;;  %v3685_v44 = vld [vmem:[#allocation8 + $0x6a0] ss:$16 sps:$4 sm:$0xff]   ;;  %v3688_v45 = vld [vmem:[#allocation8 + $0x6a8] ss:$16 sps:$4 sm:$0xff]  }
 0x1b9   :  { %2169 = vmatpush1.bf16.msra.mxu0 %v3601_v47  ;;  %2341 = vmatpush1.bf16.msra.mxu1 %v3604_v48  ;;  %v3693_v47 = vld [vmem:[#allocation8 + $0x6c4] ss:$16 sps:$4 sm:$0xff]   ;;  %v3696_v48 = vld [vmem:[#allocation8 + $0x6cc] ss:$16 sps:$4 sm:$0xff]  }
 0x1ba   :  { %2170 = vmatprep.subr.bf16.mxu0 %v3609_v49  ;;  %2342 = vmatprep.subr.bf16.mxu1 %v3612_v50  ;;  %v3691_v49 = vld [vmem:[#allocation8 + $0x6c0] ss:$16 sps:$4 sm:$0xff]   ;;  %v3694_v50 = vld [vmem:[#allocation8 + $0x6c8] ss:$16 sps:$4 sm:$0xff]  }
 0x1bd   :  { %2171 = vmatpush1.bf16.msra.mxu0 %v3607_v51  ;;  %2343 = vmatpush1.bf16.msra.mxu1 %v3610_v52  ;;  %v3699_v51 = vld [vmem:[#allocation8 + $0x6e4] ss:$16 sps:$4 sm:$0xff]   ;;  %v3702_v52 = vld [vmem:[#allocation8 + $0x6ec] ss:$16 sps:$4 sm:$0xff]  }
 0x1be   :  { %2172 = vmatprep.subr.bf16.mxu0 %v3615_v53  ;;  %2344 = vmatprep.subr.bf16.mxu1 %v3618_v54  ;;  %v3697_v53 = vld [vmem:[#allocation8 + $0x6e0] ss:$16 sps:$4 sm:$0xff]   ;;  %v3700_v54 = vld [vmem:[#allocation8 + $0x6e8] ss:$16 sps:$4 sm:$0xff]  }
 0x1c1   :  { %2173 = vmatpush1.bf16.msra.mxu0 %v3613_v55  ;;  %2345 = vmatpush1.bf16.msra.mxu1 %v3616_v56  ;;  %v3705_v55 = vld [vmem:[#allocation8 + $0x704] ss:$16 sps:$4 sm:$0xff]   ;;  %v3708_v56 = vld [vmem:[#allocation8 + $0x70c] ss:$16 sps:$4 sm:$0xff]  }
 0x1c2   :  { %2174 = vmatprep.subr.bf16.mxu0 %v3621_v57  ;;  %2346 = vmatprep.subr.bf16.mxu1 %v3624_v62  ;;  %v3703_v57 = vld [vmem:[#allocation8 + $0x700] ss:$16 sps:$4 sm:$0xff]   ;;  %v3706_v62 = vld [vmem:[#allocation8 + $0x708] ss:$16 sps:$4 sm:$0xff]  }
 0x1c5   :  { %2175 = vmatpush1.bf16.msra.mxu0 %v3619_v63  ;;  %2347 = vmatpush1.bf16.msra.mxu1 %v3622_v2  ;;  %v3711_v63 = vld [vmem:[#allocation8 + $0x724] ss:$16 sps:$4 sm:$0xff]   ;;  %v3714_v2 = vld [vmem:[#allocation8 + $0x72c] ss:$16 sps:$4 sm:$0xff]  }
 0x1c6   :  { %2176 = vmatprep.subr.bf16.mxu0 %v3627_v3  ;;  %2348 = vmatprep.subr.bf16.mxu1 %v3630_v4  ;;  %v3709_v3 = vld [vmem:[#allocation8 + $0x720] ss:$16 sps:$4 sm:$0xff]   ;;  %v3712_v4 = vld [vmem:[#allocation8 + $0x728] ss:$16 sps:$4 sm:$0xff]  }
 0x1c9   :  { %2177 = vmatpush1.bf16.msra.mxu0 %v3625_v5  ;;  %2349 = vmatpush1.bf16.msra.mxu1 %v3628_v0  ;;  %v3717_v5 = vld [vmem:[#allocation8 + $0x744] ss:$16 sps:$4 sm:$0xff]   ;;  %v3720_v0 = vld [vmem:[#allocation8 + $0x74c] ss:$16 sps:$4 sm:$0xff]  }
 0x1ca   :  { %2178 = vmatprep.subr.bf16.mxu0 %v3633_v6  ;;  %2350 = vmatprep.subr.bf16.mxu1 %v3636_v7  ;;  %v3715_v6 = vld [vmem:[#allocation8 + $0x740] ss:$16 sps:$4 sm:$0xff]   ;;  %v3718_v7 = vld [vmem:[#allocation8 + $0x748] ss:$16 sps:$4 sm:$0xff]  }
 0x1cd   :  { %2179 = vmatpush1.bf16.msra.mxu0 %v3631_v8  ;;  %2351 = vmatpush1.bf16.msra.mxu1 %v3634_v9  ;;  %v3723_v8 = vld [vmem:[#allocation8 + $0x764] ss:$16 sps:$4 sm:$0xff]   ;;  %v3726_v9 = vld [vmem:[#allocation8 + $0x76c] ss:$16 sps:$4 sm:$0xff]  }
 0x1ce   :  { %2180 = vmatprep.subr.bf16.mxu0 %v3639_v10  ;;  %2352 = vmatprep.subr.bf16.mxu1 %v3642_v11  ;;  %v3721_v10 = vld [vmem:[#allocation8 + $0x760] ss:$16 sps:$4 sm:$0xff]   ;;  %v3724_v11 = vld [vmem:[#allocation8 + $0x768] ss:$16 sps:$4 sm:$0xff]  }
 0x1d1   :  { %2181 = vmatpush1.bf16.msra.mxu0 %v3637_v12  ;;  %2353 = vmatpush1.bf16.msra.mxu1 %v3640_v13  ;;  %v3729_v12 = vld [vmem:[#allocation8 + $0x784] ss:$16 sps:$4 sm:$0xff]   ;;  %v3732_v13 = vld [vmem:[#allocation8 + $0x78c] ss:$16 sps:$4 sm:$0xff]  }
 0x1d2   :  { %2182 = vmatprep.subr.bf16.mxu0 %v3645_v15  ;;  %2354 = vmatprep.subr.bf16.mxu1 %v3648_v16  ;;  %v3727_v15 = vld [vmem:[#allocation8 + $0x780] ss:$16 sps:$4 sm:$0xff]   ;;  %v3730_v16 = vld [vmem:[#allocation8 + $0x788] ss:$16 sps:$4 sm:$0xff]  }
 0x1d5   :  { %2183 = vmatpush1.bf16.msra.mxu0 %v3643_v17  ;;  %2355 = vmatpush1.bf16.msra.mxu1 %v3646_v19  ;;  %v3735_v17 = vld [vmem:[#allocation8 + $0x7a4] ss:$16 sps:$4 sm:$0xff]   ;;  %v3738_v19 = vld [vmem:[#allocation8 + $0x7ac] ss:$16 sps:$4 sm:$0xff]  }
 0x1d6   :  { %2184 = vmatprep.subr.bf16.mxu0 %v3651_v20  ;;  %2356 = vmatprep.subr.bf16.mxu1 %v3654_v21  ;;  %v3733_v20 = vld [vmem:[#allocation8 + $0x7a0] ss:$16 sps:$4 sm:$0xff]   ;;  %v3736_v21 = vld [vmem:[#allocation8 + $0x7a8] ss:$16 sps:$4 sm:$0xff]  }
 0x1d9   :  { %2185 = vmatpush1.bf16.msra.mxu0 %v3649_v22  ;;  %2357 = vmatpush1.bf16.msra.mxu1 %v3652_v23  ;;  %v3741_v22 = vld [vmem:[#allocation8 + $0x7c4] ss:$16 sps:$4 sm:$0xff]   ;;  %v3744_v23 = vld [vmem:[#allocation8 + $0x7cc] ss:$16 sps:$4 sm:$0xff]  }
 0x1da   :  { %2197 = vmatprep.subr.bf16.mxu0 %v3657_v24  ;;  %2369 = vmatprep.subr.bf16.mxu1 %v3660_v25  ;;  %v3739_v24 = vld [vmem:[#allocation8 + $0x7c0] ss:$16 sps:$4 sm:$0xff]   ;;  %v3742_v25 = vld [vmem:[#allocation8 + $0x7c8] ss:$16 sps:$4 sm:$0xff]  }
 0x1dc   :  { %2187 = vmatmul.mubr.bf16.vlgmr.msra.gmra.mrb[4].mxu0 %v4157_v41  ;;  %2359 = vmatmul.mubr.bf16.vlgmr.msra.gmra.mrb[12].mxu1 %v4157_v41  ;;  %v3678_v41 = vld [vmem:[#allocation8 + $0x66c] ss:$16 sps:$4 sm:$0xff]  }
 0x1dd   :  { %2198 = vmatpush1.bf16.msra.mxu0 %v3655_v26  ;;  %2370 = vmatpush1.bf16.msra.mxu1 %v3658_v27  ;;  %v3747_v26 = vld [vmem:[#allocation8 + $0x7e4] ss:$16 sps:$4 sm:$0xff]   ;;  %v3750_v27 = vld [vmem:[#allocation8 + $0x7ec] ss:$16 sps:$4 sm:$0xff]  }
 0x1de   :  { %2199 = vmatprep.subr.bf16.mxu0 %v3663_v28  ;;  %2371 = vmatprep.subr.bf16.mxu1 %v3666_v1  ;;  %v3745_v28 = vld [vmem:[#allocation8 + $0x7e0] ss:$16 sps:$4 sm:$0xff]   ;;  %v3748_v1 = vld [vmem:[#allocation8 + $0x7e8] ss:$16 sps:$4 sm:$0xff]  }
 0x1df   :  { %2229 = vmatprep.mubr.bf16.mxu0 %v4169_v40  ;;  %2401 = vmatprep.mubr.bf16.mxu1 %v4169_v40  ;;  %v3682_v40 = vld [vmem:[#allocation8 + $0x688] ss:$16 sps:$4 sm:$0xff]  }
 0x1e1   :  { %2200 = vmatpush1.bf16.msra.mxu0 %v3661_v29  ;;  %2372 = vmatpush1.bf16.msra.mxu1 %v3664_v30  ;;  %v3751_v29 = vld [vmem:[#allocation10 + $0x40] sm:$0xff]  }
 0x1e2   :  { %2201 = vmatprep.subr.bf16.mxu0 %v3669_v31  ;;  %2373 = vmatprep.subr.bf16.mxu1 %v3672_v32  ;;  %v3752_v30 = vld [vmem:[#allocation10 + $0xc0] sm:$0xff]  }
 0x1e3   :  { %v3753_v31 = vld [vmem:[#allocation10] sm:$0xff]  }
 0x1e4   :  { %v3754_v32 = vld [vmem:[#allocation10 + $0x80] sm:$0xff]  }
 0x1e5   :  { %2202 = vmatpush1.bf16.msra.mxu0 %v3667_v33  ;;  %2374 = vmatpush1.bf16.msra.mxu1 %v3670_v46  ;;  %v3755_v33 = vld [vmem:[#allocation10 + $0x48] sm:$0xff]  }
 0x1e6   :  { %2203 = vmatprep.subr.bf16.mxu0 %v3675_v34  ;;  %2375 = vmatprep.subr.bf16.mxu1 %v3678_v41  ;;  %v3756_v46 = vld [vmem:[#allocation10 + $0xc8] sm:$0xff]  }
 0x1e7   :  { %v3757_v34 = vld [vmem:[#allocation10 + $0x8] sm:$0xff]  }
 0x1e8   :  { %v3758_v41 = vld [vmem:[#allocation10 + $0x88] sm:$0xff]  }
 0x1e9   :  { %2204 = vmatpush1.bf16.msra.mxu0 %v3673_v35  ;;  %2376 = vmatpush1.bf16.msra.mxu1 %v3676_v60  ;;  %v3759_v35 = vld [vmem:[#allocation10 + $0x50] sm:$0xff]  }
 0x1ea   :  { %2205 = vmatprep.subr.bf16.mxu0 %v3681_v36  ;;  %2377 = vmatprep.subr.bf16.mxu1 %v3684_v38  ;;  %v3760_v60 = vld [vmem:[#allocation10 + $0xd0] sm:$0xff]  }
 0x1eb   :  { %v3761_v36 = vld [vmem:[#allocation10 + $0x10] sm:$0xff]  }
 0x1ec   :  { %v3762_v38 = vld [vmem:[#allocation10 + $0x90] sm:$0xff]  }
 0x1ed   :  { %2206 = vmatpush1.bf16.msra.mxu0 %v3679_v39  ;;  %2378 = vmatpush1.bf16.msra.mxu1 %v3682_v40  ;;  %v3763_v39 = vld [vmem:[#allocation10 + $0x58] sm:$0xff]  }
 0x1ee   :  { %2207 = vmatprep.subr.bf16.mxu0 %v3687_v42  ;;  %2379 = vmatprep.subr.bf16.mxu1 %v3690_v43  ;;  %v3764_v40 = vld [vmem:[#allocation10 + $0xd8] sm:$0xff]   ;;  %v3767_v43 = vld [vmem:[#allocation10 + $0x60] sm:$0xff]  }
 0x1ef   :  { %v3765_v42 = vld [vmem:[#allocation10 + $0x18] sm:$0xff]  }
 0x1f1   :  { %2208 = vmatpush1.bf16.msra.mxu0 %v3685_v44  ;;  %2380 = vmatpush1.bf16.msra.mxu1 %v3688_v45  ;;  %v3768_v44 = vld [vmem:[#allocation10 + $0xe0] sm:$0xff]  }
 0x1f2   :  { %2209 = vmatprep.subr.bf16.mxu0 %v3693_v47  ;;  %2381 = vmatprep.subr.bf16.mxu1 %v3696_v48  ;;  %v3769_v45 = vld [vmem:[#allocation10 + $0x20] sm:$0xff]   ;;  %v3771_v48 = vld [vmem:[#allocation10 + $0x68] sm:$0xff]  }
 0x1f3   :  { %v3770_v47 = vld [vmem:[#allocation10 + $0xa0] sm:$0xff]  }
 0x1f5   :  { %2210 = vmatpush1.bf16.msra.mxu0 %v3691_v49  ;;  %2382 = vmatpush1.bf16.msra.mxu1 %v3694_v50  ;;  %v3772_v49 = vld [vmem:[#allocation10 + $0xe8] sm:$0xff]  }
 0x1f6   :  { %2211 = vmatprep.subr.bf16.mxu0 %v3699_v51  ;;  %2383 = vmatprep.subr.bf16.mxu1 %v3702_v52  ;;  %v3773_v50 = vld [vmem:[#allocation10 + $0x28] sm:$0xff]   ;;  %v3775_v52 = vld [vmem:[#allocation10 + $0x70] sm:$0xff]  }
 0x1f7   :  { %v3774_v51 = vld [vmem:[#allocation10 + $0xa8] sm:$0xff]  }
 0x1f9   :  { %2212 = vmatpush1.bf16.msra.mxu0 %v3697_v53  ;;  %2384 = vmatpush1.bf16.msra.mxu1 %v3700_v54  ;;  %v3776_v53 = vld [vmem:[#allocation10 + $0xf0] sm:$0xff]  }
 0x1fa   :  { %2213 = vmatprep.subr.bf16.mxu0 %v3705_v55  ;;  %2385 = vmatprep.subr.bf16.mxu1 %v3708_v56  ;;  %v3777_v54 = vld [vmem:[#allocation10 + $0x30] sm:$0xff]   ;;  %v3779_v56 = vld [vmem:[#allocation10 + $0x78] sm:$0xff]  }
 0x1fb   :  { %v3778_v55 = vld [vmem:[#allocation10 + $0xb0] sm:$0xff]  }
 0x1fd   :  { %2214 = vmatpush1.bf16.msra.mxu0 %v3703_v57  ;;  %2386 = vmatpush1.bf16.msra.mxu1 %v3706_v62  ;;  %v3780_v57 = vld [vmem:[#allocation10 + $0xf8] sm:$0xff]  }
 0x1fe   :  { %2215 = vmatprep.subr.bf16.mxu0 %v3711_v63  ;;  %2387 = vmatprep.subr.bf16.mxu1 %v3714_v2  ;;  %v3781_v62 = vld [vmem:[#allocation10 + $0x38] sm:$0xff]   ;;  %v3972_v2 = vmov 0.0  }
 0x1ff   :  { %v3782_v63 = vld [vmem:[#allocation10 + $0xb8] sm:$0xff]  }
 0x201   :  { %2216 = vmatpush1.bf16.msra.mxu0 %v3709_v3  ;;  %2388 = vmatpush1.bf16.msra.mxu1 %v3712_v4  ;;  %v766_v3 = vld [vmem:[%s4223_s4] sm:$0xf] }
 0x202   :  { %2217 = vmatprep.subr.bf16.mxu0 %v3717_v5  ;;  %2389 = vmatprep.subr.bf16.mxu1 %v3720_v0  ;;  %v771_v4 = vrot.slane %v766_v3, %v140_v59  ;;  %v779_v5 = vrot.slane %v766_v3, %v148_v14  ;;  %v775_v0 = vrot.slane %v766_v3, %v144_v61 }
 0x205   :  { %2218 = vmatpush1.bf16.msra.mxu0 %v3715_v6  ;;  %2390 = vmatpush1.bf16.msra.mxu1 %v3718_v7  ;;  %v783_v6 = vrot.slane %v766_v3, %v152_v18 }
 0x206   :  { %2219 = vmatprep.subr.bf16.mxu0 %v3723_v8  ;;  %2391 = vmatprep.subr.bf16.mxu1 %v3726_v9 }
 0x209   :  { %2220 = vmatpush1.bf16.msra.mxu0 %v3721_v10  ;;  %2392 = vmatpush1.bf16.msra.mxu1 %v3724_v11 }
 0x20a   :  { %2221 = vmatprep.subr.bf16.mxu0 %v3729_v12  ;;  %2393 = vmatprep.subr.bf16.mxu1 %v3732_v13 }
 0x20d   :  { %2222 = vmatpush1.bf16.msra.mxu0 %v3727_v15  ;;  %2394 = vmatpush1.bf16.msra.mxu1 %v3730_v16 }
 0x20e   :  { %2223 = vmatprep.subr.bf16.mxu0 %v3735_v17  ;;  %2395 = vmatprep.subr.bf16.mxu1 %v3738_v19 }
 0x211   :  { %2224 = vmatpush1.bf16.msra.mxu0 %v3733_v20  ;;  %2396 = vmatpush1.bf16.msra.mxu1 %v3736_v21 }
 0x212   :  { %2225 = vmatprep.subr.bf16.mxu0 %v3741_v22  ;;  %2397 = vmatprep.subr.bf16.mxu1 %v3744_v23 }
 0x215   :  { %2226 = vmatpush1.bf16.msra.mxu0 %v3739_v24  ;;  %2398 = vmatpush1.bf16.msra.mxu1 %v3742_v25 }
 0x216   :  { %2227 = vmatprep.subr.bf16.mxu0 %v3747_v26  ;;  %2399 = vmatprep.subr.bf16.mxu1 %v3750_v27 }
 0x219   :  { %2228 = vmatpush1.bf16.msra.mxu0 %v3745_v28  ;;  %2400 = vmatpush1.bf16.msra.mxu1 %v3748_v1 }
 0x21a   :  { %3235 = vmatprep.subr.bf16.mxu0 %v3751_v29  ;;  %3257 = vmatprep.subr.bf16.mxu1 %v3752_v30 }
 0x21c   :  { %2230 = vmatmul.mubr.bf16.vlgmr.msra.gmra.mrb[4].mxu0 %v4167_v37  ;;  %2402 = vmatmul.mubr.bf16.vlgmr.msra.gmra.mrb[12].mxu1 %v4167_v37  ;;  %v3766_v37 = vld [vmem:[#allocation10 + $0x98] sm:$0xff]  }
 0x21d   :  { %3236 = vmatpush3.bf16.msra.mxu0 %v3753_v31  ;;  %3258 = vmatpush3.bf16.msra.mxu1 %v3754_v32  ;;  %v3783_v31 = vld [vmem:[#allocation11] sm:$0xff]   ;;  %v3784_v32 = vld [vmem:[#allocation11 + $0x8] sm:$0xff]  }
 0x21e   :  { %3237 = vmatprep.subr.bf16.mxu0 %v3755_v33  ;;  %3259 = vmatprep.subr.bf16.mxu1 %v3756_v46  ;;  %v3785_v33 = vld [vmem:[#allocation11 + $0x10] sm:$0xff]   ;;  %v3786_v46 = vld [vmem:[#allocation11 + $0x18] sm:$0xff]  }
 0x221   :  { %3238 = vmatpush3.bf16.msra.mxu0 %v3757_v34  ;;  %3260 = vmatpush3.bf16.msra.mxu1 %v3758_v41  ;;  %v3787_v34 = vld [vmem:[#allocation11 + $0x20] sm:$0xff]   ;;  %v3788_v41 = vld [vmem:[#allocation11 + $0x28] sm:$0xff]  }
 0x222   :  { %3239 = vmatprep.subr.bf16.mxu0 %v3759_v35  ;;  %3261 = vmatprep.subr.bf16.mxu1 %v3760_v60  ;;  %v3789_v35 = vld [vmem:[#allocation11 + $0x30] sm:$0xff]   ;;  %v3790_v60 = vld [vmem:[#allocation11 + $0x38] sm:$0xff]  }
 0x225   :  { %3240 = vmatpush3.bf16.msra.mxu0 %v3761_v36  ;;  %3262 = vmatpush3.bf16.msra.mxu1 %v3762_v38 }
 0x226   :  { %3241 = vmatprep.subr.bf16.mxu0 %v3763_v39  ;;  %3263 = vmatprep.subr.bf16.mxu1 %v3764_v40  ;;  %v3193_v39 = vld [vmem:[%s4225_s6] ss:$0 sm:$0xff] }
 0x229   :  { %3242 = vmatpush3.bf16.msra.mxu0 %v3765_v42  ;;  %3264 = vmatpush3.bf16.msra.mxu1 %v3766_v37 }
 0x22a   :  { %3243 = vmatprep.subr.bf16.mxu0 %v3767_v43  ;;  %3265 = vmatprep.subr.bf16.mxu1 %v3768_v44 }
 0x22d   :  { %3244 = vmatpush3.bf16.msra.mxu0 %v3769_v45  ;;  %3266 = vmatpush3.bf16.msra.mxu1 %v3770_v47 }
 0x22e   :  { %3245 = vmatprep.subr.bf16.mxu0 %v3771_v48  ;;  %3267 = vmatprep.subr.bf16.mxu1 %v3772_v49 }
 0x231   :  { %3246 = vmatpush3.bf16.msra.mxu0 %v3773_v50  ;;  %3268 = vmatpush3.bf16.msra.mxu1 %v3774_v51 }
 0x232   :  { %3247 = vmatprep.subr.bf16.mxu0 %v3775_v52  ;;  %3269 = vmatprep.subr.bf16.mxu1 %v3776_v53 }
 0x235   :  { %3248 = vmatpush3.bf16.msra.mxu0 %v3777_v54  ;;  %3270 = vmatpush3.bf16.msra.mxu1 %v3778_v55 }
 0x236   :  { %3249 = vmatprep.subr.bf16.mxu0 %v3779_v56  ;;  %3271 = vmatprep.subr.bf16.mxu1 %v3780_v57 }
 0x239   :  { %3250 = vmatpush3.bf16.msra.mxu0 %v3781_v62  ;;  %3272 = vmatpush3.bf16.msra.mxu1 %v3782_v63  ;;  %v3226_v62 = vld [vmem:[%s4227_s8] ss:$0 sm:$0xff] }
 0x23a   :  { %3288 = vmatprep.subr.bf16.mxu0 %v3972_v2 }
 0x2ef   :  { %v2231_v7 = vpop.f32.mrb[4].mxu0  ;;  %v2403_v8 = vpop.f32.mrb[12].mxu1 }
 0x2f0   :  { %v3308_v9 = vadd.f32 %v2231_v7, %v771_v4  ;;  %v3312_v10 = vadd.f32 %v2403_v8, %v779_v5  ;;  %v2233_v11 = vpop.f32.mrb[5].mxu0  ;;  %v2405_v12 = vpop.f32.mrb[13].mxu1 }
 0x2f1   :  { %v3309_v13 = vadd.f32 %v2233_v11, %v775_v0  ;;  %v3313_v15 = vadd.f32 %v2405_v12, %v783_v6  ;;  %v2235_v16 = vpop.f32.mrb[6].mxu0  ;;  %v2407_v17 = vpop.f32.mrb[14].mxu1 }
 0x2f2   :  { %v3310_v59 = vadd.f32 %v2235_v16, %v771_v4  ;;  %v3314_v19 = vadd.f32 %v2407_v17, %v779_v5  ;;  %v2237_v20 = vpop.f32.mrb[7].mxu0  ;;  %v2409_v14 = vpop.f32.mrb[15].mxu1  ;;  %v2412_v61 = vmax.f32 %v3308_v9, 0.0  ;;  %v2414_v23 = vmax.f32 %v3312_v10, 0.0 }
 0x2f3   :  { %v3311_v21 = vadd.f32 %v2237_v20, %v775_v0  ;;  %v3315_v22 = vadd.f32 %v2409_v14, %v783_v6  ;;  %v2413_v24 = vmax.f32 %v3309_v13, 0.0  ;;  %v2415_v25 = vmax.f32 %v3313_v15, 0.0 }
 0x2f4   :  { %v2416_v58 = vmax.f32 %v3310_v59, 0.0  ;;  %v2418_v18 = vmax.f32 %v3314_v19, 0.0 }
 0x2f5   :  { %v2417_v26 = vmax.f32 %v3311_v21, 0.0  ;;  %v2419_v27 = vmax.f32 %v3315_v22, 0.0 }
 0x2f6   :  { %v2420_v28 = vpack.c.bf16 %v2416_v58, %v2412_v61  ;;  %v2422_v1 = vpack.c.bf16 %v2418_v18, %v2414_v23 }
 0x2f7   :  { %v2421_v29 = vpack.c.bf16 %v2417_v26, %v2413_v24  ;;  %v2423_v30 = vpack.c.bf16 %v2419_v27, %v2415_v25 }
 0x2f9   :  { %2719 = vmatprep.mubr.bf16.mxu0 %v2421_v29  ;;  %2760 = vmatprep.mubr.bf16.mxu1 %v2423_v30 }
 0x2fa   :  { %2720 = vmatmul.mubr.bf16.vlgmr.msra.gmra.mrb[8].mxu0 %v2420_v28  ;;  %2761 = vmatmul.mubr.bf16.vlgmr.msra.gmra.mrb[16].mxu1 %v2422_v1 }
 0x2fb   :  { %3289 = vmatpush3.bf16.msra.mxu0 %v3783_v31  ;;  %3304 = vmatprep.mubr.msk.bf16.mxu0 %vm3973_vm2, %v3972_v2 }
 0x2fc   :  { %3290 = vmatprep.subr.bf16.mxu0 %v3972_v2 }
 0x2ff   :  { %3291 = vmatpush3.bf16.msra.mxu0 %v3784_v32 }
 0x300   :  { %3292 = vmatprep.subr.bf16.mxu0 %v3972_v2 }
 0x303   :  { %3293 = vmatpush3.bf16.msra.mxu0 %v3785_v33 }
 0x304   :  { %3294 = vmatprep.subr.bf16.mxu0 %v3972_v2 }
 0x307   :  { %3295 = vmatpush3.bf16.msra.mxu0 %v3786_v46 }
 0x308   :  { %3296 = vmatprep.subr.bf16.mxu0 %v3972_v2 }
 0x30b   :  { %3297 = vmatpush3.bf16.msra.mxu0 %v3787_v34 }
 0x30c   :  { %3298 = vmatprep.subr.bf16.mxu0 %v3972_v2 }
 0x30f   :  { %3299 = vmatpush3.bf16.msra.mxu0 %v3788_v41 }
 0x310   :  { %3300 = vmatprep.subr.bf16.mxu0 %v3972_v2 }
 0x313   :  { %3301 = vmatpush3.bf16.msra.mxu0 %v3789_v35 }
 0x314   :  { %3302 = vmatprep.subr.bf16.mxu0 %v3972_v2 }
 0x317   :  { %3303 = vmatpush3.bf16.msra.mxu0 %v3790_v60 }
 0x3cd   :  { %v3251_v36 = vpop.f32.mrb[8].mxu0  ;;  %v3273_v38 = vpop.f32.mrb[16].mxu1 }
 0x3ce   :  { %v3252_v40 = vpop.f32.mrb[9].mxu0  ;;  %v3274_v42 = vpop.f32.mrb[17].mxu1 }
 0x3cf   :  { %v3253_v37 = vadd.f32 %v3252_v40, %v3251_v36  ;;  %v3275_v43 = vadd.f32 %v3274_v42, %v3273_v38  ;;  %v3254_v44 = vpop.f32.mrb[10].mxu0  ;;  %v3276_v45 = vpop.f32.mrb[18].mxu1 }
 0x3d0   :  { %v3255_v47 = vpop.f32.mrb[11].mxu0  ;;  %v3277_v48 = vpop.f32.mrb[19].mxu1 }
 0x3d1   :  { %v2722_v49 = vadd.f32 %v3253_v37, %v3193_v39  ;;  %v3256_v50 = vadd.f32 %v3255_v47, %v3254_v44  ;;  %v3278_v51 = vadd.f32 %v3277_v48, %v3276_v45 }
 0x3d3   :  { %v2763_v52 = vadd.f32 %v3275_v43, %v2722_v49  ;;  %v2725_v53 = vadd.f32 %v3256_v50, %v3193_v39 }
 0x3d5   :  { %v2766_v54 = vadd.f32 %v3278_v51, %v2725_v53  ;;  %v2769_v55 = vmax.f32 %v2763_v52, 0.0 }
 0x3d7   :  { %v2770_v56 = vmax.f32 %v2766_v54, 0.0 }
 0x3d9   :  { %v2771_v57 = vpack.c.bf16 %v2770_v56, %v2769_v55 }
 0x3db   :  { %3305 = vmatmul.mubr.bf16.vlgmr.msra.gmra.mrb[12].mxu0 %v2771_v57 }
 0x4ae   :  { %v2877_v63 = vpop.f32.mrb[12].mxu0 }
 0x4af   :  { %v2878_v2 = vadd.f32 %v3226_v62, %v2877_v63  ;;  %v3306_v3 = vpop.f32.mrb[13].mxu0 }
 0x4b0   :  { %v2880_v4 = vpop.f32.mrb[14].mxu0 }
 0x4b1   :  { %3791 = vtanh.f32 %v2878_v2  ;;  %v2881_v5 = vadd.f32 %v3226_v62, %v2880_v4  ;;  %v3307_v0 = vpop.f32.mrb[15].mxu0 }
 0x4b3   :  { %3793 = vtanh.f32 %v2881_v5 }
 0x4bb   :  { %v3792_v6 = vpop.eup %3791 }
 0x4bc   :  { %2886 = vst [vmem:[#allocation13] sm:$0xff] %v3792_v6 }
 0x4bd   :  { %v3794_v7 = vpop.eup %3793 }
 0x4be   :  { %2887 = vst [vmem:[#allocation13 + $0x8] sm:$0xff] %v3794_v7 }
 0x4bf   :  { %3938 = shalt.err (!%p3935_p10)
}
 0x4c0   :  { %s3939_s22 = scalar_lea.hbm %s4228_s9, 256 }
 0x4c1   :  { %p3940_p11 = scmp.ne.s32.totalorder %s4228_s9, %s3939_s22  ;;  %p3943_p12 = scmp.lt.u32.totalorder %s3939_s22, %s4228_s9 }
 0x4c3   :  { %p3945_p13 = pnand %p3943_p12, %p3940_p11 }
 0x4c5   :  { %3948 = shalt.err (!%p3945_p13)
}
 0x4c6   :  { %s3975_s2 = smov 128   ;;  %s3976_s28 = smov 8  }
 0x4c7   :  { %2899 = dma.vmem_to_hbm [thread:$0]  %s2894_s19, 256, %s4228_s9, [#allocation4], %s3975_s2, %s3975_s2, %s3976_s28  }
 0x4c8   :  { %3957 = dma.done.wait [#allocation4], 256  }
 0x4c9   :  { %3958 = vsyncadd [#allocation4], 4294967040 }
 0x4ca   :  { %2903 = vsyncpa [#allocation3], 1 }
 0x4cb   :  { %2904 = vsyncpa [#allocation6], 1 }
 0x4cc   :  { %2905 = vsyncpa [#allocation9], 1 }
 0x4cd   :  { %2906 = vsyncpa [#allocation12], 1 }
 0x4ce   :  { %2907 = vsyncpa [#allocation4], 1 }

</bundles_post_ra>
